<compile_context>
chip_gen: v5e
topology: v5e:2x2
jax: 0.10.0
libtpu: 0.0.40
codegen_flags: <defaults>
</compile_context>

<pallas_src>
import jax
import jax.numpy as jnp
from jax.experimental import pallas as pl
from jax.experimental.pallas import tpu as pltpu


def downblock_kernel(x_ref, w1_ref, b1_ref, w2_ref, b2_ref, o_ref,
                     pad1_ref, col1_ref, pad2_ref, col2_ref):
    # x_ref : (1, 2*Hp, Wp, 2*Cin)  -- NHWC block with horizontal pixel pairs
    #                                   packed into the lane dim (free reshape
    #                                   done in the wrapper).
    # w*_ref: (9*C, Cout) im2col-form weights, b*_ref: (1, Cout) biases.
    # o_ref : (1, Hp*Wp, Cout)      -- matmul-native output layout.
    # pad*_ref / col*_ref: persistent VMEM scratch (padded activation, im2col).
    Hp = pad1_ref.shape[0] - 2
    Wp = pad1_ref.shape[1] - 2
    Cin = pad1_ref.shape[2]

    # ---- MaxPool2d(2), fully in-kernel (no HBM-side gather/stack) ----------
    x = x_ref[0]                                        # (2*Hp, Wp, 2*Cin)
    colmax = jnp.maximum(x[:, :, :Cin], x[:, :, Cin:])  # horizontal pair max
    rowpair = colmax.reshape(Hp, 2, Wp, Cin)            # leading-dim-only split
    p = jnp.maximum(rowpair[:, 0], rowpair[:, 1])       # (Hp, Wp, Cin)

    def conv3x3_relu(pad_ref, col_ref, inp_hwc, w2d, b):
        H2, W2, C = inp_hwc.shape
        # (1) padding=1 halo kept in a persistent scratch: re-zero only the
        #     1-pixel border (cheap), then write the interior.
        zrow = jnp.zeros((1, W2 + 2, C), jnp.float32)
        zcol = jnp.zeros((H2 + 2, 1, C), jnp.float32)
        pad_ref[0:1, :, :] = zrow
        pad_ref[H2 + 1:H2 + 2, :, :] = zrow
        pad_ref[:, 0:1, :] = zcol
        pad_ref[:, W2 + 1:W2 + 2, :] = zcol
        pad_ref[1:H2 + 1, 1:W2 + 1, :] = inp_hwc
        # (2) im2col: 9 shifted static-window reads -> lane-offset stores into
        #     a persistent (H2*W2, 9*C) scratch.  Tap order (dy, dx) matches
        #     the (9*C, Cout) weight reshape done in the wrapper.
        for dy in range(3):
            for dx in range(3):
                t = dy * 3 + dx
                tap = pad_ref[dy:dy + H2, dx:dx + W2, :]        # (H2, W2, C)
                col_ref[:, t * C:(t + 1) * C] = tap.reshape(H2 * W2, C)
        # (3) ONE MXU matmul with K = 9*C (replaces 9 tiny K=C matmuls).
        #     NOTE: for production DeepWBNet sizes on v5e, split K into <=128
        #     chunks and tile spatially over Hp for the v7x 64 MiB VMEM budget.
        acc = jnp.dot(col_ref[...], w2d, preferred_element_type=jnp.float32)
        acc = acc + b                                            # bias (1, Cout)
        return jnp.maximum(acc, 0.0)                             # ReLU, (H2*W2, Cout)

    h1 = conv3x3_relu(pad1_ref, col1_ref, p, w1_ref[...], b1_ref[...])
    h1 = h1.reshape(Hp, Wp, w1_ref.shape[1])             # lane dim unchanged
    h2 = conv3x3_relu(pad2_ref, col2_ref, h1, w2_ref[...], b2_ref[...])
    o_ref[0] = h2.astype(o_ref.dtype)                    # (Hp*Wp, Cout)


def down_block(x_nchw, w1, b1, w2, b2):
    """x_nchw: (N, Cin, H, W); w1: (Cout, Cin, 3, 3); b1: (Cout,);
       w2: (Cout, Cout, 3, 3); b2: (Cout,). Returns (N, Cout, H//2, W//2)."""
    N, Cin, H, W = x_nchw.shape
    Cout = w1.shape[0]
    Hp, Wp = H // 2, W // 2          # floor, matches nn.MaxPool2d(2)

    # NCHW -> NHWC layout glue, then a *free* reshape packing each horizontal
    # pixel pair into lanes: (N, 2*Hp, Wp, 2*Cin).
    x = jnp.transpose(x_nchw, (0, 2, 3, 1))[:, :2 * Hp, :2 * Wp, :]
    x = x.reshape(N, 2 * Hp, Wp, 2 * Cin)

    # OIHW -> HWIO -> (9*C, Cout); row index = (dy*3+dx)*C + ci, matching the
    # kernel's im2col tap order.
    w1_2d = jnp.transpose(w1, (2, 3, 1, 0)).reshape(9 * Cin, Cout)
    w2_2d = jnp.transpose(w2, (2, 3, 1, 0)).reshape(9 * Cout, Cout)
    b1_2d = b1.reshape(1, Cout)
    b2_2d = b2.reshape(1, Cout)

    out = pl.pallas_call(
        downblock_kernel,
        out_shape=jax.ShapeDtypeStruct((N, Hp * Wp, Cout), x.dtype),
        grid_spec=pltpu.PrefetchScalarGridSpec(
            num_scalar_prefetch=0,
            grid=(N,),
            in_specs=[
                pl.BlockSpec((1, 2 * Hp, Wp, 2 * Cin), lambda n: (n, 0, 0, 0)),
                pl.BlockSpec((9 * Cin, Cout), lambda n: (0, 0)),
                pl.BlockSpec((1, Cout), lambda n: (0, 0)),
                pl.BlockSpec((9 * Cout, Cout), lambda n: (0, 0)),
                pl.BlockSpec((1, Cout), lambda n: (0, 0)),
            ],
            out_specs=pl.BlockSpec((1, Hp * Wp, Cout), lambda n: (n, 0, 0)),
            scratch_shapes=[
                pltpu.VMEM((Hp + 2, Wp + 2, Cin), jnp.float32),   # pad1
                pltpu.VMEM((Hp * Wp, 9 * Cin), jnp.float32),      # col1
                pltpu.VMEM((Hp + 2, Wp + 2, Cout), jnp.float32),  # pad2
                pltpu.VMEM((Hp * Wp, 9 * Cout), jnp.float32),     # col2
            ],
        ),
        compiler_params=pltpu.CompilerParams(
            dimension_semantics=("parallel",),
            vmem_limit_bytes=32 * 1024 * 1024,   # <= physical on v5e/v6e/v7x
        ),
    )(x, w1_2d, b1_2d, w2_2d, b2_2d)

    out = out.reshape(N, Hp, Wp, Cout)
    return jnp.transpose(out, (0, 3, 1, 2))              # back to NCHW


def ref_forward(x, w1, b1, w2, b2):
    """Pure-JAX NCHW reference matching the PyTorch DownBlock forward."""
    p = jax.lax.reduce_window(x, -jnp.inf, jax.lax.max,
                              (1, 1, 2, 2), (1, 1, 2, 2), "VALID")

    def conv(inp, w, b):
        y = jax.lax.conv_general_dilated(
            inp, w, (1, 1), "SAME",
            dimension_numbers=("NCHW", "OIHW", "NCHW"))
        return jax.nn.relu(y + b.reshape(1, -1, 1, 1))

    return conv(conv(p, w1, b1), w2, b2)


if __name__ == "__main__":
    N, Cin, Cout, H, W = 2, 4, 8, 16, 16

    key = jax.random.PRNGKey(0)
    kx, kw1, kb1, kw2, kb2 = jax.random.split(key, 5)
    x = jax.random.normal(kx, (N, Cin, H, W), dtype=jnp.float32)
    # deterministic synthetic parameters (Conv2d shapes from DoubleConvBlock)
    w1 = 0.1 * jax.random.normal(kw1, (Cout, Cin, 3, 3), dtype=jnp.float32)
    b1 = 0.1 * jax.random.normal(kb1, (Cout,), dtype=jnp.float32)
    w2 = 0.1 * jax.random.normal(kw2, (Cout, Cout, 3, 3), dtype=jnp.float32)
    b2 = 0.1 * jax.random.normal(kb2, (Cout,), dtype=jnp.float32)

    out = jax.block_until_ready(down_block(x, w1, b1, w2, b2))
    ref = jax.block_until_ready(ref_forward(x, w1, b1, w2, b2))

    assert out.shape == (N, Cout, H // 2, W // 2), out.shape
    assert jnp.allclose(out, ref, atol=1e-4, rtol=1e-4), float(
        jnp.max(jnp.abs(out - ref)))
    print("KERNEL_OK")
</pallas_src>

<mosaic_0001>
module attributes {stable_mosaic.version = 11 : i64} {
  func.func @downblock_kernel(%arg0: i32, %arg1: memref<1x16x8x8xf32, #tpu.memory_space<vmem>>, %arg2: memref<36x8xf32, #tpu.memory_space<vmem>>, %arg3: memref<1x8xf32, #tpu.memory_space<vmem>>, %arg4: memref<72x8xf32, #tpu.memory_space<vmem>>, %arg5: memref<1x8xf32, #tpu.memory_space<vmem>>, %arg6: memref<1x64x8xf32, #tpu.memory_space<vmem>>, %arg7: memref<10x10x4xf32, #tpu.memory_space<vmem>>, %arg8: memref<64x36xf32, #tpu.memory_space<vmem>>, %arg9: memref<10x10x8xf32, #tpu.memory_space<vmem>>, %arg10: memref<64x72xf32, #tpu.memory_space<vmem>>) attributes {dimension_semantics = [#tpu.dimension_semantics<parallel>], iteration_bounds = array<i64: 2>, scalar_prefetch = 0 : i64, scratch_operands = 4 : i64, tpu.core_type = #tpu.core_type<tc>, window_params = [{transform_indices = @transform_0, window_bounds = array<i64: 1, 16, 8, 8>}, {pipeline_mode = #tpu.pipeline_mode<synchronous>, transform_indices = @transform_1, window_bounds = array<i64: 36, 8>}, {pipeline_mode = #tpu.pipeline_mode<synchronous>, transform_indices = @transform_2, window_bounds = array<i64: 1, 8>}, {pipeline_mode = #tpu.pipeline_mode<synchronous>, transform_indices = @transform_3, window_bounds = array<i64: 72, 8>}, {pipeline_mode = #tpu.pipeline_mode<synchronous>, transform_indices = @transform_4, window_bounds = array<i64: 1, 8>}, {transform_indices = @transform_5, window_bounds = array<i64: 1, 64, 8>}]} {
    %c0 = arith.constant 0 : index
    %c0_0 = arith.constant 0 : index
    %c0_1 = arith.constant 0 : index
    %c0_2 = arith.constant 0 : index
    %0 = vector.load %arg1[%c0, %c0_0, %c0_1, %c0_2] : memref<1x16x8x8xf32, #tpu.memory_space<vmem>>, vector<1x16x8x8xf32>
    %1 = vector.shape_cast %0 : vector<1x16x8x8xf32> to vector<16x8x8xf32>
    %2 = vector.extract_strided_slice %1 {offsets = [0, 0, 0], sizes = [16, 8, 4], strides = [1, 1, 1]} : vector<16x8x8xf32> to vector<16x8x4xf32>
    %3 = vector.extract_strided_slice %1 {offsets = [0, 0, 4], sizes = [16, 8, 4], strides = [1, 1, 1]} : vector<16x8x8xf32> to vector<16x8x4xf32>
    %4 = arith.maximumf %2, %3 : vector<16x8x4xf32>
    %5 = vector.shape_cast %4 : vector<16x8x4xf32> to vector<8x2x8x4xf32>
    %6 = vector.extract_strided_slice %5 {offsets = [0, 0, 0, 0], sizes = [8, 1, 8, 4], strides = [1, 1, 1, 1]} : vector<8x2x8x4xf32> to vector<8x1x8x4xf32>
    %7 = vector.shape_cast %6 : vector<8x1x8x4xf32> to vector<8x8x4xf32>
    %8 = vector.extract_strided_slice %5 {offsets = [0, 1, 0, 0], sizes = [8, 1, 8, 4], strides = [1, 1, 1, 1]} : vector<8x2x8x4xf32> to vector<8x1x8x4xf32>
    %9 = vector.shape_cast %8 : vector<8x1x8x4xf32> to vector<8x8x4xf32>
    %10 = arith.maximumf %7, %9 : vector<8x8x4xf32>
    %c0_3 = arith.constant 0 : index
    %c0_4 = arith.constant 0 : index
    %11 = vector.load %arg2[%c0_3, %c0_4] : memref<36x8xf32, #tpu.memory_space<vmem>>, vector<36x8xf32>
    %c0_5 = arith.constant 0 : index
    %c0_6 = arith.constant 0 : index
    %12 = vector.load %arg3[%c0_5, %c0_6] : memref<1x8xf32, #tpu.memory_space<vmem>>, vector<1x8xf32>
    %cst = arith.constant 0.000000e+00 : f32
    %13 = vector.broadcast %cst : f32 to vector<1x10x4xf32>
    %cst_7 = arith.constant 0.000000e+00 : f32
    %14 = vector.broadcast %cst_7 : f32 to vector<10x1x4xf32>
    %c0_8 = arith.constant 0 : index
    %c0_9 = arith.constant 0 : index
    %c0_10 = arith.constant 0 : index
    %15 = vector.load %arg7[%c0_8, %c0_9, %c0_10] : memref<10x10x4xf32, #tpu.memory_space<vmem>>, vector<1x10x4xf32>
    tpu.vector_store %arg7[%c0_8, %c0_9, %c0_10], %13 {strides = array<i32>} : memref<10x10x4xf32, #tpu.memory_space<vmem>>, vector<1x10x4xf32>,
    %c9 = arith.constant 9 : index
    %c0_11 = arith.constant 0 : index
    %c0_12 = arith.constant 0 : index
    %16 = vector.load %arg7[%c9, %c0_11, %c0_12] : memref<10x10x4xf32, #tpu.memory_space<vmem>>, vector<1x10x4xf32>
    tpu.vector_store %arg7[%c9, %c0_11, %c0_12], %13 {strides = array<i32>} : memref<10x10x4xf32, #tpu.memory_space<vmem>>, vector<1x10x4xf32>,
    %c0_13 = arith.constant 0 : index
    %c0_14 = arith.constant 0 : index
    %c0_15 = arith.constant 0 : index
    %17 = vector.load %arg7[%c0_13, %c0_14, %c0_15] : memref<10x10x4xf32, #tpu.memory_space<vmem>>, vector<10x1x4xf32>
    tpu.vector_store %arg7[%c0_13, %c0_14, %c0_15], %14 {strides = array<i32>} : memref<10x10x4xf32, #tpu.memory_space<vmem>>, vector<10x1x4xf32>,
    %c0_16 = arith.constant 0 : index
    %c9_17 = arith.constant 9 : index
    %c0_18 = arith.constant 0 : index
    %18 = vector.load %arg7[%c0_16, %c9_17, %c0_18] : memref<10x10x4xf32, #tpu.memory_space<vmem>>, vector<10x1x4xf32>
    tpu.vector_store %arg7[%c0_16, %c9_17, %c0_18], %14 {strides = array<i32>} : memref<10x10x4xf32, #tpu.memory_space<vmem>>, vector<10x1x4xf32>,
    %c1 = arith.constant 1 : index
    %c1_19 = arith.constant 1 : index
    %c0_20 = arith.constant 0 : index
    %19 = vector.load %arg7[%c1, %c1_19, %c0_20] : memref<10x10x4xf32, #tpu.memory_space<vmem>>, vector<8x8x4xf32>
    tpu.vector_store %arg7[%c1, %c1_19, %c0_20], %10 {strides = array<i32>} : memref<10x10x4xf32, #tpu.memory_space<vmem>>, vector<8x8x4xf32>,
    %c0_21 = arith.constant 0 : index
    %c0_22 = arith.constant 0 : index
    %c0_23 = arith.constant 0 : index
    %20 = vector.load %arg7[%c0_21, %c0_22, %c0_23] : memref<10x10x4xf32, #tpu.memory_space<vmem>>, vector<8x8x4xf32>
    %21 = vector.shape_cast %20 : vector<8x8x4xf32> to vector<64x4xf32>
    %c0_24 = arith.constant 0 : index
    %c0_25 = arith.constant 0 : index
    %22 = vector.load %arg8[%c0_24, %c0_25] : memref<64x36xf32, #tpu.memory_space<vmem>>, vector<64x4xf32>
    tpu.vector_store %arg8[%c0_24, %c0_25], %21 {strides = array<i32>} : memref<64x36xf32, #tpu.memory_space<vmem>>, vector<64x4xf32>,
    %c0_26 = arith.constant 0 : index
    %c1_27 = arith.constant 1 : index
    %c0_28 = arith.constant 0 : index
    %23 = vector.load %arg7[%c0_26, %c1_27, %c0_28] : memref<10x10x4xf32, #tpu.memory_space<vmem>>, vector<8x8x4xf32>
    %24 = vector.shape_cast %23 : vector<8x8x4xf32> to vector<64x4xf32>
    %c0_29 = arith.constant 0 : index
    %c4 = arith.constant 4 : index
    %25 = vector.load %arg8[%c0_29, %c4] : memref<64x36xf32, #tpu.memory_space<vmem>>, vector<64x4xf32>
    tpu.vector_store %arg8[%c0_29, %c4], %24 {strides = array<i32>} : memref<64x36xf32, #tpu.memory_space<vmem>>, vector<64x4xf32>,
    %c0_30 = arith.constant 0 : index
    %c2 = arith.constant 2 : index
    %c0_31 = arith.constant 0 : index
    %26 = vector.load %arg7[%c0_30, %c2, %c0_31] : memref<10x10x4xf32, #tpu.memory_space<vmem>>, vector<8x8x4xf32>
    %27 = vector.shape_cast %26 : vector<8x8x4xf32> to vector<64x4xf32>
    %c0_32 = arith.constant 0 : index
    %c8 = arith.constant 8 : index
    %28 = vector.load %arg8[%c0_32, %c8] : memref<64x36xf32, #tpu.memory_space<vmem>>, vector<64x4xf32>
    tpu.vector_store %arg8[%c0_32, %c8], %27 {strides = array<i32>} : memref<64x36xf32, #tpu.memory_space<vmem>>, vector<64x4xf32>,
    %c1_33 = arith.constant 1 : index
    %c0_34 = arith.constant 0 : index
    %c0_35 = arith.constant 0 : index
    %29 = vector.load %arg7[%c1_33, %c0_34, %c0_35] : memref<10x10x4xf32, #tpu.memory_space<vmem>>, vector<8x8x4xf32>
    %30 = vector.shape_cast %29 : vector<8x8x4xf32> to vector<64x4xf32>
    %c0_36 = arith.constant 0 : index
    %c12 = arith.constant 12 : index
    %31 = vector.load %arg8[%c0_36, %c12] : memref<64x36xf32, #tpu.memory_space<vmem>>, vector<64x4xf32>
    tpu.vector_store %arg8[%c0_36, %c12], %30 {strides = array<i32>} : memref<64x36xf32, #tpu.memory_space<vmem>>, vector<64x4xf32>,
    %c1_37 = arith.constant 1 : index
    %c1_38 = arith.constant 1 : index
    %c0_39 = arith.constant 0 : index
    %32 = vector.load %arg7[%c1_37, %c1_38, %c0_39] : memref<10x10x4xf32, #tpu.memory_space<vmem>>, vector<8x8x4xf32>
    %33 = vector.shape_cast %32 : vector<8x8x4xf32> to vector<64x4xf32>
    %c0_40 = arith.constant 0 : index
    %c16 = arith.constant 16 : index
    %34 = vector.load %arg8[%c0_40, %c16] : memref<64x36xf32, #tpu.memory_space<vmem>>, vector<64x4xf32>
    tpu.vector_store %arg8[%c0_40, %c16], %33 {strides = array<i32>} : memref<64x36xf32, #tpu.memory_space<vmem>>, vector<64x4xf32>,
    %c1_41 = arith.constant 1 : index
    %c2_42 = arith.constant 2 : index
    %c0_43 = arith.constant 0 : index
    %35 = vector.load %arg7[%c1_41, %c2_42, %c0_43] : memref<10x10x4xf32, #tpu.memory_space<vmem>>, vector<8x8x4xf32>
    %36 = vector.shape_cast %35 : vector<8x8x4xf32> to vector<64x4xf32>
    %c0_44 = arith.constant 0 : index
    %c20 = arith.constant 20 : index
    %37 = vector.load %arg8[%c0_44, %c20] : memref<64x36xf32, #tpu.memory_space<vmem>>, vector<64x4xf32>
    tpu.vector_store %arg8[%c0_44, %c20], %36 {strides = array<i32>} : memref<64x36xf32, #tpu.memory_space<vmem>>, vector<64x4xf32>,
    %c2_45 = arith.constant 2 : index
    %c0_46 = arith.constant 0 : index
    %c0_47 = arith.constant 0 : index
    %38 = vector.load %arg7[%c2_45, %c0_46, %c0_47] : memref<10x10x4xf32, #tpu.memory_space<vmem>>, vector<8x8x4xf32>
    %39 = vector.shape_cast %38 : vector<8x8x4xf32> to vector<64x4xf32>
    %c0_48 = arith.constant 0 : index
    %c24 = arith.constant 24 : index
    %40 = vector.load %arg8[%c0_48, %c24] : memref<64x36xf32, #tpu.memory_space<vmem>>, vector<64x4xf32>
    tpu.vector_store %arg8[%c0_48, %c24], %39 {strides = array<i32>} : memref<64x36xf32, #tpu.memory_space<vmem>>, vector<64x4xf32>,
    %c2_49 = arith.constant 2 : index
    %c1_50 = arith.constant 1 : index
    %c0_51 = arith.constant 0 : index
    %41 = vector.load %arg7[%c2_49, %c1_50, %c0_51] : memref<10x10x4xf32, #tpu.memory_space<vmem>>, vector<8x8x4xf32>
    %42 = vector.shape_cast %41 : vector<8x8x4xf32> to vector<64x4xf32>
    %c0_52 = arith.constant 0 : index
    %c28 = arith.constant 28 : index
    %43 = vector.load %arg8[%c0_52, %c28] : memref<64x36xf32, #tpu.memory_space<vmem>>, vector<64x4xf32>
    tpu.vector_store %arg8[%c0_52, %c28], %42 {strides = array<i32>} : memref<64x36xf32, #tpu.memory_space<vmem>>, vector<64x4xf32>,
    %c2_53 = arith.constant 2 : index
    %c2_54 = arith.constant 2 : index
    %c0_55 = arith.constant 0 : index
    %44 = vector.load %arg7[%c2_53, %c2_54, %c0_55] : memref<10x10x4xf32, #tpu.memory_space<vmem>>, vector<8x8x4xf32>
    %45 = vector.shape_cast %44 : vector<8x8x4xf32> to vector<64x4xf32>
    %c0_56 = arith.constant 0 : index
    %c32 = arith.constant 32 : index
    %46 = vector.load %arg8[%c0_56, %c32] : memref<64x36xf32, #tpu.memory_space<vmem>>, vector<64x4xf32>
    tpu.vector_store %arg8[%c0_56, %c32], %45 {strides = array<i32>} : memref<64x36xf32, #tpu.memory_space<vmem>>, vector<64x4xf32>,
    %c0_57 = arith.constant 0 : index
    %c0_58 = arith.constant 0 : index
    %47 = vector.load %arg8[%c0_57, %c0_58] : memref<64x36xf32, #tpu.memory_space<vmem>>, vector<64x36xf32>
    %cst_59 = arith.constant dense<0.000000e+00> : vector<64x8xf32>
    %48 = tpu.matmul %47, %11, %cst_59 {dimension_numbers = #tpu.dot_dimension_numbers<[1], [0], [0], [1], [0, 0, 1, 1], [], []>} : vector<64x36xf32>, vector<36x8xf32>, vector<64x8xf32> -> vector<64x8xf32>
    %49 = vector.broadcast %12 : vector<1x8xf32> to vector<64x8xf32>
    %50 = arith.addf %48, %49 : vector<64x8xf32>
    %cst_60 = arith.constant 0.000000e+00 : f32
    %51 = vector.broadcast %cst_60 : f32 to vector<64x8xf32>
    %52 = arith.maximumf %50, %51 : vector<64x8xf32>
    %53 = vector.shape_cast %52 : vector<64x8xf32> to vector<8x8x8xf32>
    %c0_61 = arith.constant 0 : index
    %c0_62 = arith.constant 0 : index
    %54 = vector.load %arg4[%c0_61, %c0_62] : memref<72x8xf32, #tpu.memory_space<vmem>>, vector<72x8xf32>
    %c0_63 = arith.constant 0 : index
    %c0_64 = arith.constant 0 : index
    %55 = vector.load %arg5[%c0_63, %c0_64] : memref<1x8xf32, #tpu.memory_space<vmem>>, vector<1x8xf32>
    %cst_65 = arith.constant 0.000000e+00 : f32
    %56 = vector.broadcast %cst_65 : f32 to vector<1x10x8xf32>
    %cst_66 = arith.constant 0.000000e+00 : f32
    %57 = vector.broadcast %cst_66 : f32 to vector<10x1x8xf32>
    %c0_67 = arith.constant 0 : index
    %c0_68 = arith.constant 0 : index
    %c0_69 = arith.constant 0 : index
    %58 = vector.load %arg9[%c0_67, %c0_68, %c0_69] : memref<10x10x8xf32, #tpu.memory_space<vmem>>, vector<1x10x8xf32>
    tpu.vector_store %arg9[%c0_67, %c0_68, %c0_69], %56 {strides = array<i32>} : memref<10x10x8xf32, #tpu.memory_space<vmem>>, vector<1x10x8xf32>,
    %c9_70 = arith.constant 9 : index
    %c0_71 = arith.constant 0 : index
    %c0_72 = arith.constant 0 : index
    %59 = vector.load %arg9[%c9_70, %c0_71, %c0_72] : memref<10x10x8xf32, #tpu.memory_space<vmem>>, vector<1x10x8xf32>
    tpu.vector_store %arg9[%c9_70, %c0_71, %c0_72], %56 {strides = array<i32>} : memref<10x10x8xf32, #tpu.memory_space<vmem>>, vector<1x10x8xf32>,
    %c0_73 = arith.constant 0 : index
    %c0_74 = arith.constant 0 : index
    %c0_75 = arith.constant 0 : index
    %60 = vector.load %arg9[%c0_73, %c0_74, %c0_75] : memref<10x10x8xf32, #tpu.memory_space<vmem>>, vector<10x1x8xf32>
    tpu.vector_store %arg9[%c0_73, %c0_74, %c0_75], %57 {strides = array<i32>} : memref<10x10x8xf32, #tpu.memory_space<vmem>>, vector<10x1x8xf32>,
    %c0_76 = arith.constant 0 : index
    %c9_77 = arith.constant 9 : index
    %c0_78 = arith.constant 0 : index
    %61 = vector.load %arg9[%c0_76, %c9_77, %c0_78] : memref<10x10x8xf32, #tpu.memory_space<vmem>>, vector<10x1x8xf32>
    tpu.vector_store %arg9[%c0_76, %c9_77, %c0_78], %57 {strides = array<i32>} : memref<10x10x8xf32, #tpu.memory_space<vmem>>, vector<10x1x8xf32>,
    %c1_79 = arith.constant 1 : index
    %c1_80 = arith.constant 1 : index
    %c0_81 = arith.constant 0 : index
    %62 = vector.load %arg9[%c1_79, %c1_80, %c0_81] : memref<10x10x8xf32, #tpu.memory_space<vmem>>, vector<8x8x8xf32>
    tpu.vector_store %arg9[%c1_79, %c1_80, %c0_81], %53 {strides = array<i32>} : memref<10x10x8xf32, #tpu.memory_space<vmem>>, vector<8x8x8xf32>,
    %c0_82 = arith.constant 0 : index
    %c0_83 = arith.constant 0 : index
    %c0_84 = arith.constant 0 : index
    %63 = vector.load %arg9[%c0_82, %c0_83, %c0_84] : memref<10x10x8xf32, #tpu.memory_space<vmem>>, vector<8x8x8xf32>
    %64 = vector.shape_cast %63 : vector<8x8x8xf32> to vector<64x8xf32>
    %c0_85 = arith.constant 0 : index
    %c0_86 = arith.constant 0 : index
    %65 = vector.load %arg10[%c0_85, %c0_86] : memref<64x72xf32, #tpu.memory_space<vmem>>, vector<64x8xf32>
    tpu.vector_store %arg10[%c0_85, %c0_86], %64 {strides = array<i32>} : memref<64x72xf32, #tpu.memory_space<vmem>>, vector<64x8xf32>,
    %c0_87 = arith.constant 0 : index
    %c1_88 = arith.constant 1 : index
    %c0_89 = arith.constant 0 : index
    %66 = vector.load %arg9[%c0_87, %c1_88, %c0_89] : memref<10x10x8xf32, #tpu.memory_space<vmem>>, vector<8x8x8xf32>
    %67 = vector.shape_cast %66 : vector<8x8x8xf32> to vector<64x8xf32>
    %c0_90 = arith.constant 0 : index
    %c8_91 = arith.constant 8 : index
    %68 = vector.load %arg10[%c0_90, %c8_91] : memref<64x72xf32, #tpu.memory_space<vmem>>, vector<64x8xf32>
    tpu.vector_store %arg10[%c0_90, %c8_91], %67 {strides = array<i32>} : memref<64x72xf32, #tpu.memory_space<vmem>>, vector<64x8xf32>,
    %c0_92 = arith.constant 0 : index
    %c2_93 = arith.constant 2 : index
    %c0_94 = arith.constant 0 : index
    %69 = vector.load %arg9[%c0_92, %c2_93, %c0_94] : memref<10x10x8xf32, #tpu.memory_space<vmem>>, vector<8x8x8xf32>
    %70 = vector.shape_cast %69 : vector<8x8x8xf32> to vector<64x8xf32>
    %c0_95 = arith.constant 0 : index
    %c16_96 = arith.constant 16 : index
    %71 = vector.load %arg10[%c0_95, %c16_96] : memref<64x72xf32, #tpu.memory_space<vmem>>, vector<64x8xf32>
    tpu.vector_store %arg10[%c0_95, %c16_96], %70 {strides = array<i32>} : memref<64x72xf32, #tpu.memory_space<vmem>>, vector<64x8xf32>,
    %c1_97 = arith.constant 1 : index
    %c0_98 = arith.constant 0 : index
    %c0_99 = arith.constant 0 : index
    %72 = vector.load %arg9[%c1_97, %c0_98, %c0_99] : memref<10x10x8xf32, #tpu.memory_space<vmem>>, vector<8x8x8xf32>
    %73 = vector.shape_cast %72 : vector<8x8x8xf32> to vector<64x8xf32>
    %c0_100 = arith.constant 0 : index
    %c24_101 = arith.constant 24 : index
    %74 = vector.load %arg10[%c0_100, %c24_101] : memref<64x72xf32, #tpu.memory_space<vmem>>, vector<64x8xf32>
    tpu.vector_store %arg10[%c0_100, %c24_101], %73 {strides = array<i32>} : memref<64x72xf32, #tpu.memory_space<vmem>>, vector<64x8xf32>,
    %c1_102 = arith.constant 1 : index
    %c1_103 = arith.constant 1 : index
    %c0_104 = arith.constant 0 : index
    %75 = vector.load %arg9[%c1_102, %c1_103, %c0_104] : memref<10x10x8xf32, #tpu.memory_space<vmem>>, vector<8x8x8xf32>
    %76 = vector.shape_cast %75 : vector<8x8x8xf32> to vector<64x8xf32>
    %c0_105 = arith.constant 0 : index
    %c32_106 = arith.constant 32 : index
    %77 = vector.load %arg10[%c0_105, %c32_106] : memref<64x72xf32, #tpu.memory_space<vmem>>, vector<64x8xf32>
    tpu.vector_store %arg10[%c0_105, %c32_106], %76 {strides = array<i32>} : memref<64x72xf32, #tpu.memory_space<vmem>>, vector<64x8xf32>,
    %c1_107 = arith.constant 1 : index
    %c2_108 = arith.constant 2 : index
    %c0_109 = arith.constant 0 : index
    %78 = vector.load %arg9[%c1_107, %c2_108, %c0_109] : memref<10x10x8xf32, #tpu.memory_space<vmem>>, vector<8x8x8xf32>
    %79 = vector.shape_cast %78 : vector<8x8x8xf32> to vector<64x8xf32>
    %c0_110 = arith.constant 0 : index
    %c40 = arith.constant 40 : index
    %80 = vector.load %arg10[%c0_110, %c40] : memref<64x72xf32, #tpu.memory_space<vmem>>, vector<64x8xf32>
    tpu.vector_store %arg10[%c0_110, %c40], %79 {strides = array<i32>} : memref<64x72xf32, #tpu.memory_space<vmem>>, vector<64x8xf32>,
    %c2_111 = arith.constant 2 : index
    %c0_112 = arith.constant 0 : index
    %c0_113 = arith.constant 0 : index
    %81 = vector.load %arg9[%c2_111, %c0_112, %c0_113] : memref<10x10x8xf32, #tpu.memory_space<vmem>>, vector<8x8x8xf32>
    %82 = vector.shape_cast %81 : vector<8x8x8xf32> to vector<64x8xf32>
    %c0_114 = arith.constant 0 : index
    %c48 = arith.constant 48 : index
    %83 = vector.load %arg10[%c0_114, %c48] : memref<64x72xf32, #tpu.memory_space<vmem>>, vector<64x8xf32>
    tpu.vector_store %arg10[%c0_114, %c48], %82 {strides = array<i32>} : memref<64x72xf32, #tpu.memory_space<vmem>>, vector<64x8xf32>,
    %c2_115 = arith.constant 2 : index
    %c1_116 = arith.constant 1 : index
    %c0_117 = arith.constant 0 : index
    %84 = vector.load %arg9[%c2_115, %c1_116, %c0_117] : memref<10x10x8xf32, #tpu.memory_space<vmem>>, vector<8x8x8xf32>
    %85 = vector.shape_cast %84 : vector<8x8x8xf32> to vector<64x8xf32>
    %c0_118 = arith.constant 0 : index
    %c56 = arith.constant 56 : index
    %86 = vector.load %arg10[%c0_118, %c56] : memref<64x72xf32, #tpu.memory_space<vmem>>, vector<64x8xf32>
    tpu.vector_store %arg10[%c0_118, %c56], %85 {strides = array<i32>} : memref<64x72xf32, #tpu.memory_space<vmem>>, vector<64x8xf32>,
    %c2_119 = arith.constant 2 : index
    %c2_120 = arith.constant 2 : index
    %c0_121 = arith.constant 0 : index
    %87 = vector.load %arg9[%c2_119, %c2_120, %c0_121] : memref<10x10x8xf32, #tpu.memory_space<vmem>>, vector<8x8x8xf32>
    %88 = vector.shape_cast %87 : vector<8x8x8xf32> to vector<64x8xf32>
    %c0_122 = arith.constant 0 : index
    %c64 = arith.constant 64 : index
    %89 = vector.load %arg10[%c0_122, %c64] : memref<64x72xf32, #tpu.memory_space<vmem>>, vector<64x8xf32>
    tpu.vector_store %arg10[%c0_122, %c64], %88 {strides = array<i32>} : memref<64x72xf32, #tpu.memory_space<vmem>>, vector<64x8xf32>,
    %c0_123 = arith.constant 0 : index
    %c0_124 = arith.constant 0 : index
    %90 = vector.load %arg10[%c0_123, %c0_124] : memref<64x72xf32, #tpu.memory_space<vmem>>, vector<64x72xf32>
    %cst_125 = arith.constant dense<0.000000e+00> : vector<64x8xf32>
    %91 = tpu.matmul %90, %54, %cst_125 {dimension_numbers = #tpu.dot_dimension_numbers<[1], [0], [0], [1], [0, 0, 1, 1], [], []>} : vector<64x72xf32>, vector<72x8xf32>, vector<64x8xf32> -> vector<64x8xf32>
    %92 = vector.broadcast %55 : vector<1x8xf32> to vector<64x8xf32>
    %93 = arith.addf %91, %92 : vector<64x8xf32>
    %cst_126 = arith.constant 0.000000e+00 : f32
    %94 = vector.broadcast %cst_126 : f32 to vector<64x8xf32>
    %95 = arith.maximumf %93, %94 : vector<64x8xf32>
    %c0_127 = arith.constant 0 : index
    %c0_128 = arith.constant 0 : index
    %c0_129 = arith.constant 0 : index
    %96 = vector.load %arg6[%c0_127, %c0_128, %c0_129] : memref<1x64x8xf32, #tpu.memory_space<vmem>>, vector<1x64x8xf32>
    %97 = vector.shape_cast %96 : vector<1x64x8xf32> to vector<64x8xf32>
    %98 = vector.shape_cast %95 : vector<64x8xf32> to vector<1x64x8xf32>
    tpu.vector_store %arg6[%c0_127, %c0_128, %c0_129], %98 {strides = array<i32>} : memref<1x64x8xf32, #tpu.memory_space<vmem>>, vector<1x64x8xf32>,
    return
  }
  func.func @transform_0(%arg0: i32) -> (i32, i32, i32, i32) {
    %c0_i32 = arith.constant 0 : i32
    %c0_i32_0 = arith.constant 0 : i32
    %c0_i32_1 = arith.constant 0 : i32
    %c0_i32_2 = arith.constant 0 : i32
    return %arg0, %c0_i32, %c0_i32_0, %c0_i32_1 : i32, i32, i32, i32
  }
  func.func @transform_1(%arg0: i32) -> (i32, i32) {
    %c0_i32 = arith.constant 0 : i32
    %c0_i32_0 = arith.constant 0 : i32
    %c0_i32_1 = arith.constant 0 : i32
    return %c0_i32, %c0_i32_0 : i32, i32
  }
  func.func @transform_2(%arg0: i32) -> (i32, i32) {
    %c0_i32 = arith.constant 0 : i32
    %c0_i32_0 = arith.constant 0 : i32
    %c0_i32_1 = arith.constant 0 : i32
    return %c0_i32, %c0_i32_0 : i32, i32
  }
  func.func @transform_3(%arg0: i32) -> (i32, i32) {
    %c0_i32 = arith.constant 0 : i32
    %c0_i32_0 = arith.constant 0 : i32
    %c0_i32_1 = arith.constant 0 : i32
    return %c0_i32, %c0_i32_0 : i32, i32
  }
  func.func @transform_4(%arg0: i32) -> (i32, i32) {
    %c0_i32 = arith.constant 0 : i32
    %c0_i32_0 = arith.constant 0 : i32
    %c0_i32_1 = arith.constant 0 : i32
    return %c0_i32, %c0_i32_0 : i32, i32
  }
  func.func @transform_5(%arg0: i32) -> (i32, i32, i32) {
    %c0_i32 = arith.constant 0 : i32
    %c0_i32_0 = arith.constant 0 : i32
    %c0_i32_1 = arith.constant 0 : i32
    return %arg0, %c0_i32, %c0_i32_0 : i32, i32, i32
  }
}

</mosaic_0001>

<bundles_post_ra>
// kernel: tpu_custom_call.1
= control target key start
LH: loop header
LB: loop body
LE: loop exit
PB: predicated region body
PF: predicated region fallthrough
CT: control target
= control target key end

     0   :  { %s1594_s18 = smov 0   ;;  %s2253_s0 = inlined_call_operand.vmem [shape: f32[2,16,8,8], index: 0, kind: input, shape index: {}]   ;;  %s2254_s1 = inlined_call_operand.vmem [shape: f32[36,8], index: 1, kind: input, shape index: {}]   ;;  %s2255_s2 = inlined_call_operand.vmem [shape: f32[1,8], index: 2, kind: input, shape index: {}]   ;;  %s2256_s3 = inlined_call_operand.vmem [shape: f32[72,8], index: 3, kind: input, shape index: {}]   ;;  %s2257_s4 = inlined_call_operand.vmem [shape: f32[1,8], index: 4, kind: input, shape index: {}]   ;;  %s2258_s5 = inlined_call_operand.vmem [shape: f32[2,64,8], index: 5, kind: output, shape index: {}]  }
   0x1 LB: > { %s1474_s19 = sadd.s32 4294967295, %s1548_s18   ;;  %p1478_p0 = scmp.ge.s32.totalorder %s1548_s18, 1  ;;  %s1548_s18 = sphi %s1594_s18, %s15_s18  }
   0x2   : > { %p187_p1 = scmp.lt.s32.totalorder %s1548_s18, 3 }
   0x4   : > { %p188_p2 = pnand %p1478_p0, %p187_p1 }
   0x5   : > { %p215_p3 = scmp.lt.s32.totalorder (!%p188_p2), %s1474_s19, 1  ;;  %s1550_s24 = smov (!%p188_p2), 124  }
   0x6   : > { %191 = sbr.rel (%p188_p2) target bundleno = 933 (0x3a5), region = 40  ;;  %s1552_s25 = smov (!%p188_p2), 4  }
   0x7   : > { %s1553_s26 = smov (!%p188_p2), 8   ;;  %s1554_s27 = smov (!%p188_p2), 20  }
   0x8   : > { %s1555_s28 = smov (!%p188_p2), 16   ;;  %s1556_s29 = smov (!%p188_p2), 12  }
   0x9   : > { %s1557_s30 = smov (!%p188_p2), 32   ;;  %s1558_s6 = smov (!%p188_p2), 28  }
   0xa   : > { %s1559_s7 = smov (!%p188_p2), 24   ;;  %s1560_s22 = smov (!%p188_p2), 40  }
   0xb   : > { %s2260_s19 = smov (!%p215_p3, %s1474_s19), 1  ;;  %vm335_vm0 = vcmask 31744   ;;  %vm337_vm1 = vcmask 25600   ;;  %v1551_v15 = vmov 0.0   ;;  %vm342_vm2 = vcmask 24576  }
   0xc   : > { %s1502_s20 = sshll.u32 %s2260_s19, 7  ;;  %336 = vst.msk [vmem:[#allocation2] sm:$0xff] %vm335_vm0, %v1551_v15  ;;  %vm428_vm3 = vcmask 64544   ;;  %vm477_vm4 = vcmask 97344   ;;  %vm817_vm5 = vcmask 1043456   ;;  %vm526_vm6 = vcmask 130144  }
   0xd   : > { %s1608_s23 = scalar_lea.vmem %s2253_s0, %s1502_s20  ;;  %338 = vst.msk [vmem:[#allocation2 + $0x8] sm:$0x3] %vm337_vm1, %v1551_v15  ;;  %vm575_vm7 = vcmask 162944   ;;  %vm624_vm8 = vcmask 195744   ;;  %vm674_vm9 = vcmask 228544   ;;  %vm723_vm10 = vcmask 261344  }
   0xe   : > { %v1611_v0 = vld [vmem:[%s1608_s23 + $0x10] sm:$0xff]  ;;  %v1614_v1 = vld [vmem:[%s1608_s23] sm:$0xff]  ;;  %v1626_v3 = vld [vmem:[%s1608_s23 + $0x18] sm:$0xff]  ;;  %353 = vst.msk [vmem:[#allocation2 + $0x9] sm:$0x1] %vm342_vm2, %v1551_v15  ;;  %vm772_vm11 = vcmask 294144  }
   0xf   : > { %261 = vrot.lane.b32.xlu1 %v1611_v0, %s1550_s24  ;;  %257 = vrot.lane.b32.xlu0 %v1614_v1, %s1550_s24  ;;  %v1621_v2 = vld [vmem:[%s1608_s23 + $0x20] sm:$0xff]  ;;  %v1629_v4 = vld [vmem:[%s1608_s23 + $0x8] sm:$0xff]  ;;  %340 = vst.msk [vmem:[#allocation2 + $0x90] sm:$0xff] %vm335_vm0, %v1551_v15  ;;  %vm792_vm12 = vcmask 293888   ;;  %vm882_vm13 = vcmask 58368   ;;  %vm880_vm14 = vcmask 64512  }
  0x10   : > { %265 = vrot.lane.b32.xlu2 %v1621_v2, %s1550_s24  ;;  %v1632_v5 = vld [vmem:[%s1608_s23 + $0x28] sm:$0xff]  ;;  %v1641_v6 = vld [vmem:[%s1608_s23 + $0x38] sm:$0xff]  ;;  %v1644_v7 = vld [vmem:[%s1608_s23 + $0x30] sm:$0xff]  ;;  %341 = vst.msk [vmem:[#allocation2 + $0x98] sm:$0x3] %vm337_vm1, %v1551_v15  ;;  %vm887_vm15 = vcmask 57344  }
  0x11   : > { %v1647_v8 = vld [vmem:[%s1608_s23 + $0x40] sm:$0xff]  ;;  %v1656_v9 = vld [vmem:[%s1608_s23 + $0x48] sm:$0xff]  ;;  %v1659_v10 = vld [vmem:[%s1608_s23 + $0x50] sm:$0xff]  ;;  %343 = vst.msk [vmem:[#allocation2] sm:$0x1] %vm342_vm2, %v1551_v15  ;;  %vm1022_vm1 = vcmask 195712  }
  0x12   : > { %v1662_v11 = vld [vmem:[%s1608_s23 + $0x58] sm:$0xff]  ;;  %v1671_v12 = vld [vmem:[%s1608_s23 + $0x68] sm:$0xff]  ;;  %v1674_v13 = vld [vmem:[%s1608_s23 + $0x60] sm:$0xff]  ;;  %344 = vst.msk [vmem:[#allocation2 + $0x10] sm:$0x1] %vm342_vm2, %v1551_v15 }
  0x13   : > { %v1681_v14 = vld [vmem:[%s1608_s23 + $0x70] sm:$0xff]  ;;  %345 = vst.msk [vmem:[#allocation2 + $0x20] sm:$0x1] %vm342_vm2, %v1551_v15  ;;  %v1702_v17 = vld [vmem:[%s1608_s23 + $0x78] sm:$0xff]  ;;  %s1561_s23 = smov 64  }
  0x14   : > { %346 = vst.msk [vmem:[#allocation2 + $0x30] sm:$0x1] %vm342_vm2, %v1551_v15  ;;  %v388_v16 = vld [vmem:[#allocation2 + $0x1] sm:$0xff] }
  0x15   : > { %v437_v18 = vld [vmem:[#allocation2 + $0x2] sm:$0xff]  ;;  %347 = vst.msk [vmem:[#allocation2 + $0x40] sm:$0x1] %vm342_vm2, %v1551_v15 }
  0x16   : > { %348 = vst.msk [vmem:[#allocation2 + $0x50] sm:$0x1] %vm342_vm2, %v1551_v15 }
  0x17   : > { %263 = vrot.lane.b32.xlu1 %v1626_v3, %s1550_s24  ;;  %259 = vrot.lane.b32.xlu0 %v1629_v4, %s1550_s24  ;;  %349 = vst.msk [vmem:[#allocation2 + $0x60] sm:$0x1] %vm342_vm2, %v1551_v15 }
  0x18   : > { %267 = vrot.lane.b32.xlu2 %v1632_v5, %s1550_s24  ;;  %350 = vst.msk [vmem:[#allocation2 + $0x70] sm:$0x1] %vm342_vm2, %v1551_v15 }
  0x19   : > { %351 = vst.msk [vmem:[#allocation2 + $0x80] sm:$0x1] %vm342_vm2, %v1551_v15 }
  0x1a   : > { %354 = vst.msk [vmem:[#allocation2 + $0x19] sm:$0x1] %vm342_vm2, %v1551_v15 }
  0x1b   : > { %355 = vst.msk [vmem:[#allocation2 + $0x29] sm:$0x1] %vm342_vm2, %v1551_v15 }
  0x1c   : > { %356 = vst.msk [vmem:[#allocation2 + $0x39] sm:$0x1] %vm342_vm2, %v1551_v15 }
  0x1d   : > { %357 = vst.msk [vmem:[#allocation2 + $0x49] sm:$0x1] %vm342_vm2, %v1551_v15 }
  0x1e   : > { %358 = vst.msk [vmem:[#allocation2 + $0x59] sm:$0x1] %vm342_vm2, %v1551_v15 }
  0x1f   : > { %271 = vrot.lane.b32.xlu1 %v1641_v6, %s1550_s24  ;;  %269 = vrot.lane.b32.xlu0 %v1644_v7, %s1550_s24  ;;  %359 = vst.msk [vmem:[#allocation2 + $0x69] sm:$0x1] %vm342_vm2, %v1551_v15 }
  0x20   : > { %273 = vrot.lane.b32.xlu2 %v1647_v8, %s1550_s24  ;;  %360 = vst.msk [vmem:[#allocation2 + $0x79] sm:$0x1] %vm342_vm2, %v1551_v15 }
  0x21   : > { %361 = vst.msk [vmem:[#allocation2 + $0x89] sm:$0x1] %vm342_vm2, %v1551_v15 }
  0x22   : > { %352 = vst.msk [vmem:[#allocation2 + $0x90] sm:$0x1] %vm342_vm2, %v1551_v15 }
  0x23   : > { %362 = vst.msk [vmem:[#allocation2 + $0x99] sm:$0x1] %vm342_vm2, %v1551_v15  ;;  %vm1071_vm2 = vcmask 261312  }
  0x24   : > { %883 = vst.msk [vmem:[#allocation4 + $0x8] sm:$0x3] %vm882_vm13, %v1551_v15 }
  0x25   : > { %881 = vst.msk [vmem:[#allocation4] sm:$0xff] %vm880_vm14, %v1551_v15 }
  0x26   : > { %885 = vst.msk [vmem:[#allocation4 + $0x90] sm:$0xff] %vm880_vm14, %v1551_v15 }
  0x27   : > { %275 = vrot.lane.b32.xlu0 %v1656_v9, %s1550_s24  ;;  %277 = vrot.lane.b32.xlu1 %v1659_v10, %s1550_s24  ;;  %898 = vst.msk [vmem:[#allocation4 + $0x9] sm:$0x1] %vm887_vm15, %v1551_v15 }
  0x28   : > { %279 = vrot.lane.b32.xlu2 %v1662_v11, %s1550_s24  ;;  %886 = vst.msk [vmem:[#allocation4 + $0x98] sm:$0x3] %vm882_vm13, %v1551_v15 }
  0x29   : > { %888 = vst.msk [vmem:[#allocation4] sm:$0x1] %vm887_vm15, %v1551_v15 }
  0x2a   : > { %889 = vst.msk [vmem:[#allocation4 + $0x10] sm:$0x1] %vm887_vm15, %v1551_v15 }
  0x2b   : > { %890 = vst.msk [vmem:[#allocation4 + $0x20] sm:$0x1] %vm887_vm15, %v1551_v15 }
  0x2c   : > { %891 = vst.msk [vmem:[#allocation4 + $0x30] sm:$0x1] %vm887_vm15, %v1551_v15 }
  0x2d   : > { %892 = vst.msk [vmem:[#allocation4 + $0x40] sm:$0x1] %vm887_vm15, %v1551_v15 }
  0x2e   : > { %893 = vst.msk [vmem:[#allocation4 + $0x50] sm:$0x1] %vm887_vm15, %v1551_v15 }
  0x2f   : > { %283 = vrot.lane.b32.xlu1 %v1671_v12, %s1550_s24  ;;  %281 = vrot.lane.b32.xlu0 %v1674_v13, %s1550_s24  ;;  %894 = vst.msk [vmem:[#allocation4 + $0x60] sm:$0x1] %vm887_vm15, %v1551_v15 }
  0x30   : > { %285 = vrot.lane.b32.xlu2 %v1681_v14, %s1550_s24  ;;  %895 = vst.msk [vmem:[#allocation4 + $0x70] sm:$0x1] %vm887_vm15, %v1551_v15 }
  0x31   : > { %896 = vst.msk [vmem:[#allocation4 + $0x80] sm:$0x1] %vm887_vm15, %v1551_v15 }
  0x32   : > { %897 = vst.msk [vmem:[#allocation4 + $0x90] sm:$0x1] %vm887_vm15, %v1551_v15 }
  0x33   : > { %899 = vst.msk [vmem:[#allocation4 + $0x19] sm:$0x1] %vm887_vm15, %v1551_v15 }
  0x34   : > { %900 = vst.msk [vmem:[#allocation4 + $0x29] sm:$0x1] %vm887_vm15, %v1551_v15 }
  0x35   : > { %901 = vst.msk [vmem:[#allocation4 + $0x39] sm:$0x1] %vm887_vm15, %v1551_v15 }
  0x36   : > { %902 = vst.msk [vmem:[#allocation4 + $0x49] sm:$0x1] %vm887_vm15, %v1551_v15 }
  0x37   : > { %404 = vrot.lane.b32.xlu1 %v388_v16, %s1552_s25  ;;  %287 = vrot.lane.b32.xlu0 %v1702_v17, %s1550_s24  ;;  %903 = vst.msk [vmem:[#allocation4 + $0x59] sm:$0x1] %vm887_vm15, %v1551_v15  ;;  %s1562_s24 = smov 56  }
  0x38   : > { %453 = vrot.lane.b32.xlu2 %v437_v18, %s1553_s26  ;;  %v333_v18 = vld [vmem:[%s2254_s1 + $0x20] sm:$0xf]  ;;  %904 = vst.msk [vmem:[#allocation4 + $0x69] sm:$0x1] %vm887_vm15, %v1551_v15 }
  0x39   : > { %1483 = vmatpush.msk.msra.mxu0 %vm817_vm5, %v333_v18  ;;  %1504 = vmatpush.msk.msra.mxu3 %vm817_vm5, %v333_v18  ;;  %v933_v18 = vld [vmem:[#allocation4 + $0x1] sm:$0xff]  ;;  %905 = vst.msk [vmem:[#allocation4 + $0x79] sm:$0x1] %vm887_vm15, %v1551_v15  ;;  %vm1219_vm5 = vcmask 458112  }
  0x3a   : > { %906 = vst.msk [vmem:[#allocation4 + $0x89] sm:$0x1] %vm887_vm15, %v1551_v15 }
  0x3b   : > { %907 = vst.msk [vmem:[#allocation4 + $0x99] sm:$0x1] %vm887_vm15, %v1551_v15 }
  0x6a   : > { %v266_v19 = vpop.permute.xlu2 %265 }
  0x6b   : > { %v309_v20 = vmax.f32 %v1621_v2, %v266_v19  ;;  %v332_v19 = vld [vmem:[%s2254_s1 + $0x18] sm:$0xff] }
  0x6c   : > { %833 = vmatpush.msra.mxu0 %v332_v19  ;;  %1505 = vmatpush.msra.mxu3 %v332_v19 }
  0x72   : > { %v268_v21 = vpop.permute.xlu2 %267 }
  0x73   : > { %v310_v24 = vmax.f32 %v1632_v5, %v268_v21 }
  0x75   : > { %v323_v25 = vmax.f32 %v309_v20, %v310_v24  ;;  %v331_v20 = vld [vmem:[%s2254_s1 + $0x10] sm:$0xff]  ;;  %v329_v24 = vld [vmem:[%s2254_s1] sm:$0xff] }
  0x76   : > { %834 = vmatpush.msra.mxu0 %v331_v20  ;;  %1506 = vmatpush.msra.mxu3 %v331_v20 }
  0x77   : > { %366 = vst.msk [vmem:[#allocation2 + $0x31] sm:$0xff] %vm335_vm0, %v323_v25 }
  0x7a   : > { %v274_v47 = vpop.permute.xlu2 %273 }
  0x7b   : > { %v313_v49 = vmax.f32 %v1647_v8, %v274_v47 }
  0x7e   : > { %v635_v34 = vld [vmem:[#allocation2 + $0x30] sm:$0xff] }
  0x7f   : > { %383 = vst.msk [vmem:[#allocation3 + $0x18] sm:$0xff] %vm335_vm0, %v635_v34  ;;  %v733_v52 = vld [vmem:[#allocation2 + $0x32] sm:$0xff] }
  0x80   : > { %v684_v53 = vld [vmem:[#allocation2 + $0x31] sm:$0xff] }
  0x81   : > { %v262_v22 = vpop.permute.xlu1 %261  ;;  %v258_v23 = vpop.permute.xlu0 %257 }
  0x82   : > { %v307_v26 = vmax.f32 %v1611_v0, %v262_v22  ;;  %v305_v29 = vmax.f32 %v1614_v1, %v258_v23  ;;  %v280_v54 = vpop.permute.xlu2 %279  ;;  %v330_v22 = vld [vmem:[%s2254_s1 + $0x8] sm:$0xff] }
  0x83   : > { %v316_v56 = vmax.f32 %v1662_v11, %v280_v54  ;;  %835 = vmatpush.msra.mxu0 %v330_v22  ;;  %1507 = vmatpush.msra.mxu3 %v330_v22  ;;  %v982_v22 = vld [vmem:[#allocation4 + $0x2] sm:$0xff] }
  0x85   : > { %836 = vmatpush.msra.mxu0 %v329_v24  ;;  %1508 = vmatpush.msra.mxu3 %v329_v24 }
  0x89   : > { %v264_v27 = vpop.permute.xlu1 %263  ;;  %v260_v28 = vpop.permute.xlu0 %259 }
  0x8a   : > { %v308_v30 = vmax.f32 %v1626_v3, %v264_v27  ;;  %v306_v31 = vmax.f32 %v1629_v4, %v260_v28 }
  0x8c   : > { %v322_v32 = vmax.f32 %v307_v26, %v308_v30  ;;  %v321_v33 = vmax.f32 %v305_v29, %v306_v31 }
  0x8e   : > { %365 = vst.msk [vmem:[#allocation2 + $0x21] sm:$0xff] %vm335_vm0, %v322_v32 }
  0x8f   : > { %364 = vst.msk [vmem:[#allocation2 + $0x11] sm:$0xff] %vm335_vm0, %v321_v33 }
  0x91   : > { %v272_v39 = vpop.permute.xlu1 %271  ;;  %v270_v40 = vpop.permute.xlu0 %269 }
  0x92   : > { %v312_v41 = vmax.f32 %v1641_v6, %v272_v39  ;;  %v311_v42 = vmax.f32 %v1644_v7, %v270_v40  ;;  %v286_v7 = vpop.permute.xlu2 %285 }
  0x93   : > { %v319_v8 = vmax.f32 %v1681_v14, %v286_v7 }
  0x94   : > { %v324_v43 = vmax.f32 %v311_v42, %v312_v41 }
  0x95   : > { %v634_v35 = vld [vmem:[#allocation2 + $0x20] sm:$0xff] }
  0x96   : > { %v584_v36 = vld [vmem:[#allocation2 + $0x12] sm:$0xff]  ;;  %382 = vst.msk [vmem:[#allocation3 + $0x10] sm:$0xff] %vm335_vm0, %v634_v35  ;;  %v732_v44 = vld [vmem:[#allocation2 + $0x22] sm:$0xff] }
  0x97   : > { %v535_v37 = vld [vmem:[#allocation2 + $0x11] sm:$0xff]  ;;  %600 = vrot.lane.b32.xlu2 %v584_v36, %s1554_s27  ;;  %367 = vst.msk [vmem:[#allocation2 + $0x41] sm:$0xff] %vm335_vm0, %v324_v43  ;;  %v683_v45 = vld [vmem:[#allocation2 + $0x21] sm:$0xff] }
  0x98   : > { %v486_v38 = vld [vmem:[#allocation2 + $0x10] sm:$0xff]  ;;  %551 = vrot.lane.b32.xlu1 %v535_v37, %s1555_s28 }
  0x99   : > { %381 = vst.msk [vmem:[#allocation3 + $0x8] sm:$0xff] %vm335_vm0, %v486_v38  ;;  %502 = vrot.lane.b32.xlu0 %v486_v38, %s1556_s29  ;;  %v276_v48 = vpop.permute.xlu0 %275  ;;  %v278_v55 = vpop.permute.xlu1 %277 }
  0x9a   : > { %v314_v50 = vmax.f32 %v1656_v9, %v276_v48  ;;  %v315_v57 = vmax.f32 %v1659_v10, %v278_v55  ;;  %v372_v9 = vld [vmem:[#allocation2] sm:$0xff]  ;;  %v454_v16 = vpop.permute.xlu2 %453 }
  0x9b   : > { %380 = vst.msk [vmem:[#allocation3] sm:$0xff] %vm335_vm0, %v372_v9 }
  0x9c   : > { %v325_v51 = vmax.f32 %v313_v49, %v314_v50  ;;  %v326_v58 = vmax.f32 %v315_v57, %v316_v56  ;;  %v739_v50 = vld [vmem:[#allocation2 + $0x92] sm:$0xff] }
  0x9e   : > { %v636_v46 = vld [vmem:[#allocation2 + $0x40] sm:$0xff]  ;;  %368 = vst.msk [vmem:[#allocation2 + $0x51] sm:$0xff] %vm335_vm0, %v325_v51 }
  0x9f   : > { %748 = vrot.lane.b32.xlu2 %v732_v44, %s1557_s30  ;;  %384 = vst.msk [vmem:[#allocation3 + $0x20] sm:$0xff] %vm335_vm0, %v636_v46  ;;  %v685_v60 = vld [vmem:[#allocation2 + $0x41] sm:$0xff] }
  0xa0   : > { %699 = vrot.lane.b32.xlu1 %v683_v45, %s1558_s6  ;;  %369 = vst.msk [vmem:[#allocation2 + $0x61] sm:$0xff] %vm335_vm0, %v326_v58  ;;  %v734_v3 = vld [vmem:[#allocation2 + $0x42] sm:$0xff]  ;;  %v641_v58 = vld [vmem:[#allocation2 + $0x90] sm:$0xff] }
  0xa1   : > { %650 = vrot.lane.b32.xlu0 %v634_v35, %s1559_s7  ;;  %v284_v62 = vpop.permute.xlu1 %283  ;;  %v282_v63 = vpop.permute.xlu0 %281 }
  0xa2   : > { %v318_v0 = vmax.f32 %v1671_v12, %v284_v62  ;;  %v317_v1 = vmax.f32 %v1674_v13, %v282_v63 }
  0xa4   : > { %v327_v2 = vmax.f32 %v317_v1, %v318_v0 }
  0xa5   : > { %v637_v59 = vld [vmem:[#allocation2 + $0x50] sm:$0xff] }
  0xa6   : > { %385 = vst.msk [vmem:[#allocation3 + $0x28] sm:$0xff] %vm335_vm0, %v637_v59  ;;  %v442_v5 = vld [vmem:[#allocation2 + $0x52] sm:$0xff] }
  0xa7   : > { %504 = vrot.lane.b32.xlu2 %v634_v35, %s1556_s29  ;;  %v1779_v61 = vld [vmem:[#allocation2 + $0x60] sm:$0xff]  ;;  %370 = vst.msk [vmem:[#allocation2 + $0x71] sm:$0xff] %vm335_vm0, %v327_v2  ;;  %v393_v6 = vld [vmem:[#allocation2 + $0x51] sm:$0xff] }
  0xa8   : > { %455 = vrot.lane.b32.xlu1 %v584_v36, %s1553_s26  ;;  %386 = vst.msk [vmem:[#allocation3 + $0x30] sm:$0xff] %vm335_vm0, %v1779_v61  ;;  %v540_v14 = vld [vmem:[#allocation2 + $0x61] sm:$0xff] }
  0xa9   : > { %406 = vrot.lane.b32.xlu0 %v535_v37, %s1552_s25  ;;  %v405_v10 = vpop.permute.xlu1 %404  ;;  %v288_v11 = vpop.permute.xlu0 %287  ;;  %v589_v21 = vld [vmem:[#allocation2 + $0x62] sm:$0xff] }
  0xaa   : > { %429 = vst.msk [vmem:[#allocation3] sm:$0xff] %vm428_vm3, %v405_v10  ;;  %v320_v12 = vmax.f32 %v1702_v17, %v288_v11 }
  0xab   : > { %478 = vst.msk [vmem:[#allocation3] sm:$0xff] %vm477_vm4, %v454_v16 }
  0xac   : > { %v328_v13 = vmax.f32 %v319_v8, %v320_v12 }
  0xae   : > { %v1794_v4 = vld [vmem:[#allocation2 + $0x70] sm:$0xff]  ;;  %371 = vst.msk [vmem:[#allocation2 + $0x81] sm:$0xff] %vm335_vm0, %v328_v13 }
  0xaf   : > { %652 = vrot.lane.b32.xlu2 %v635_v34, %s1559_s7  ;;  %387 = vst.msk [vmem:[#allocation3 + $0x38] sm:$0xff] %vm335_vm0, %v1794_v4  ;;  %v688_v25 = vld [vmem:[#allocation2 + $0x71] sm:$0xff]  ;;  %vm973_vm0 = vcmask 130112  }
  0xb0   : > { %602 = vrot.lane.b32.xlu1 %v732_v44, %s1554_s27  ;;  %v737_v27 = vld [vmem:[#allocation2 + $0x72] sm:$0xff] }
  0xb1   : > { %553 = vrot.lane.b32.xlu0 %v683_v45, %s1555_s28 }
  0xb5   : > { %v738_v38 = vld [vmem:[#allocation2 + $0x82] sm:$0xff] }
  0xb6   : > { %v689_v39 = vld [vmem:[#allocation2 + $0x81] sm:$0xff] }
  0xb7   : > { %408 = vrot.lane.b32.xlu2 %v683_v45, %s1552_s25  ;;  %v640_v40 = vld [vmem:[#allocation2 + $0x80] sm:$0xff] }
  0xb8   : > { %750 = vrot.lane.b32.xlu1 %v733_v52, %s1557_s30 }
  0xb9   : > { %701 = vrot.lane.b32.xlu0 %v684_v53, %s1558_s6 }
  0xbf   : > { %555 = vrot.lane.b32.xlu2 %v684_v53, %s1555_s28 }
  0xc0   : > { %506 = vrot.lane.b32.xlu1 %v635_v34, %s1556_s29 }
  0xc1   : > { %457 = vrot.lane.b32.xlu0 %v732_v44, %s1553_s26 }
  0xc7   : > { %703 = vrot.lane.b32.xlu2 %v685_v60, %s1558_s6 }
  0xc8   : > { %654 = vrot.lane.b32.xlu1 %v636_v46, %s1559_s7 }
  0xc9   : > { %604 = vrot.lane.b32.xlu0 %v733_v52, %s1554_s27 }
  0xcf   : > { %459 = vrot.lane.b32.xlu2 %v733_v52, %s1553_s26  ;;  %v690_v52 = vld [vmem:[#allocation2 + $0x91] sm:$0xff] }
  0xd0   : > { %410 = vrot.lane.b32.xlu1 %v684_v53, %s1552_s25 }
  0xd1   : > { %752 = vrot.lane.b32.xlu0 %v734_v3, %s1557_s30 }
  0xd7   : > { %606 = vrot.lane.b32.xlu2 %v734_v3, %s1554_s27 }
  0xd8   : > { %557 = vrot.lane.b32.xlu1 %v685_v60, %s1555_s28 }
  0xd9   : > { %508 = vrot.lane.b32.xlu0 %v636_v46, %s1556_s29 }
  0xdf   : > { %463 = vrot.lane.b32.xlu2 %v442_v5, %s1553_s26 }
  0xe0   : > { %656 = vrot.lane.b32.xlu1 %v637_v59, %s1559_s7 }
  0xe1   : > { %414 = vrot.lane.b32.xlu0 %v393_v6, %s1552_s25 }
  0xe7   : > { %754 = vrot.lane.b32.xlu2 %v442_v5, %s1557_s30 }
  0xe8   : > { %512 = vrot.lane.b32.xlu1 %v1779_v61, %s1556_s29 }
  0xe9   : > { %705 = vrot.lane.b32.xlu0 %v393_v6, %s1558_s6 }
  0xef   : > { %461 = vrot.lane.b32.xlu2 %v734_v3, %s1553_s26 }
  0xf0   : > { %561 = vrot.lane.b32.xlu1 %v540_v14, %s1555_s28 }
  0xf1   : > { %412 = vrot.lane.b32.xlu0 %v685_v60, %s1552_s25  ;;  %v601_v17 = vpop.permute.xlu2 %600 }
  0xf7   : > { %660 = vrot.lane.b32.xlu2 %v1794_v4, %s1559_s7 }
  0xf8   : > { %510 = vrot.lane.b32.xlu1 %v637_v59, %s1556_s29 }
  0xf9   : > { %610 = vrot.lane.b32.xlu0 %v589_v21, %s1554_s27  ;;  %v749_v23 = vpop.permute.xlu2 %748 }
  0xff   : > { %608 = vrot.lane.b32.xlu2 %v442_v5, %s1554_s27 }
 0x100   : > { %709 = vrot.lane.b32.xlu1 %v688_v25, %s1558_s6 }
 0x101   : > { %559 = vrot.lane.b32.xlu0 %v393_v6, %s1555_s28  ;;  %v505_v26 = vpop.permute.xlu2 %504 }
 0x107   : > { %658 = vrot.lane.b32.xlu2 %v1779_v61, %s1559_s7 }
 0x108   : > { %416 = vrot.lane.b32.xlu1 %v540_v14, %s1552_s25 }
 0x109   : > { %758 = vrot.lane.b32.xlu0 %v737_v27, %s1557_s30  ;;  %v653_v28 = vpop.permute.xlu2 %652 }
 0x10a   : > { %v552_v29 = vpop.permute.xlu1 %551 }
 0x10b   : > { %v503_v30 = vpop.permute.xlu0 %502 }
 0x10c   : > { %527 = vst.msk [vmem:[#allocation3] sm:$0xff] %vm526_vm6, %v503_v30  ;;  %v1964_v30 = vld [vmem:[%s2255_s2] ss:$0 sm:$0xff] }
 0x10d   : > { %576 = vst.msk [vmem:[#allocation3] sm:$0xff] %vm575_vm7, %v552_v29 }
 0x10e   : > { %625 = vst.msk [vmem:[#allocation3] sm:$0xff] %vm624_vm8, %v601_v17 }
 0x10f   : > { %514 = vrot.lane.b32.xlu2 %v1794_v4, %s1556_s29 }
 0x110   : > { %707 = vrot.lane.b32.xlu1 %v540_v14, %s1558_s6 }
 0x111   : > { %465 = vrot.lane.b32.xlu0 %v589_v21, %s1553_s26  ;;  %v409_v31 = vpop.permute.xlu2 %408 }
 0x112   : > { %v700_v32 = vpop.permute.xlu1 %699  ;;  %431 = vst.msk [vmem:[#allocation3 + $0x10] sm:$0xff] %vm428_vm3, %v409_v31 }
 0x113   : > { %v651_v33 = vpop.permute.xlu0 %650 }
 0x114   : > { %675 = vst.msk [vmem:[#allocation3] sm:$0xff] %vm674_vm9, %v651_v33 }
 0x115   : > { %724 = vst.msk [vmem:[#allocation3] sm:$0xff] %vm723_vm10, %v700_v32 }
 0x116   : > { %773 = vst.msk [vmem:[#allocation3] sm:$0xff] %vm772_vm11, %v749_v23 }
 0x117   : > { %612 = vrot.lane.b32.xlu2 %v737_v27, %s1554_s27 }
 0x118   : > { %563 = vrot.lane.b32.xlu1 %v688_v25, %s1555_s28 }
 0x119   : > { %756 = vrot.lane.b32.xlu0 %v589_v21, %s1557_s30  ;;  %v556_v34 = vpop.permute.xlu2 %555 }
 0x11a   : > { %v456_v35 = vpop.permute.xlu1 %455 }
 0x11b   : > { %v407_v36 = vpop.permute.xlu0 %406 }
 0x11c   : > { %430 = vst.msk [vmem:[#allocation3 + $0x8] sm:$0xff] %vm428_vm3, %v407_v36 }
 0x11d   : > { %479 = vst.msk [vmem:[#allocation3 + $0x8] sm:$0xff] %vm477_vm4, %v456_v35  ;;  %v781_v37 = vld [vmem:[#allocation3] sm:$0xff] }
 0x11e   : > { %528 = vst.msk [vmem:[#allocation3 + $0x8] sm:$0xff] %vm526_vm6, %v505_v26  ;;  %1484 = vmatmul.msk.f32.vlgmr.msra.gmra.mxu0 %vm792_vm12, %v781_v37 }
 0x11f   : > { %760 = vrot.lane.b32.xlu2 %v738_v38, %s1557_s30 }
 0x120   : > { %711 = vrot.lane.b32.xlu1 %v689_v39, %s1558_s6 }
 0x121   : > { %662 = vrot.lane.b32.xlu0 %v640_v40, %s1559_s7  ;;  %v704_v42 = vpop.permute.xlu2 %703 }
 0x122   : > { %v603_v41 = vpop.permute.xlu1 %602 }
 0x123   : > { %v554_v43 = vpop.permute.xlu0 %553 }
 0x124   : > { %577 = vst.msk [vmem:[#allocation3 + $0x8] sm:$0xff] %vm575_vm7, %v554_v43 }
 0x125   : > { %626 = vst.msk [vmem:[#allocation3 + $0x8] sm:$0xff] %vm624_vm8, %v603_v41 }
 0x126   : > { %676 = vst.msk [vmem:[#allocation3 + $0x8] sm:$0xff] %vm674_vm9, %v653_v28 }
 0x127   : > { %516 = vrot.lane.b32.xlu2 %v640_v40, %s1556_s29 }
 0x128   : > { %467 = vrot.lane.b32.xlu1 %v737_v27, %s1553_s26 }
 0x129   : > { %418 = vrot.lane.b32.xlu0 %v688_v25, %s1552_s25  ;;  %v460_v46 = vpop.permute.xlu2 %459  ;;  %s1563_s25 = smov 48  }
 0x12a   : > { %v751_v44 = vpop.permute.xlu1 %750 }
 0x12b   : > { %v702_v45 = vpop.permute.xlu0 %701 }
 0x12c   : > { %725 = vst.msk [vmem:[#allocation3 + $0x8] sm:$0xff] %vm723_vm10, %v702_v45 }
 0x12d   : > { %774 = vst.msk [vmem:[#allocation3 + $0x8] sm:$0xff] %vm772_vm11, %v751_v44 }
 0x12f   : > { %664 = vrot.lane.b32.xlu2 %v641_v58, %s1559_s7 }
 0x130   : > { %614 = vrot.lane.b32.xlu1 %v738_v38, %s1554_s27 }
 0x131   : > { %565 = vrot.lane.b32.xlu0 %v689_v39, %s1555_s28  ;;  %v607_v51 = vpop.permute.xlu2 %606 }
 0x132   : > { %v507_v47 = vpop.permute.xlu1 %506 }
 0x133   : > { %v458_v48 = vpop.permute.xlu0 %457 }
 0x134   : > { %480 = vst.msk [vmem:[#allocation3 + $0x10] sm:$0xff] %vm477_vm4, %v458_v48  ;;  %v782_v49 = vld [vmem:[#allocation3 + $0x8] sm:$0xff] }
 0x135   : > { %529 = vst.msk [vmem:[#allocation3 + $0x10] sm:$0xff] %vm526_vm6, %v507_v47  ;;  %1485 = vmatmul.msk.f32.gmra.mxu0 %vm792_vm12, %v782_v49 }
 0x136   : > { %578 = vst.msk [vmem:[#allocation3 + $0x10] sm:$0xff] %vm575_vm7, %v556_v34 }
 0x137   : > { %949 = vrot.lane.b32.xlu2 %v933_v18, %s1553_s26 }
 0x138   : > { %762 = vrot.lane.b32.xlu1 %v739_v50, %s1557_s30  ;;  %v917_v50 = vld [vmem:[#allocation4] sm:$0xff] }
 0x139   : > { %713 = vrot.lane.b32.xlu0 %v690_v52, %s1558_s6  ;;  %v464_v55 = vpop.permute.xlu2 %463  ;;  %925 = vst.msk [vmem:[#allocation5] sm:$0xff] %vm880_vm14, %v917_v50 }
 0x13a   : > { %v655_v53 = vpop.permute.xlu1 %654 }
 0x13b   : > { %v605_v54 = vpop.permute.xlu0 %604 }
 0x13c   : > { %627 = vst.msk [vmem:[#allocation3 + $0x10] sm:$0xff] %vm624_vm8, %v605_v54 }
 0x13d   : > { %677 = vst.msk [vmem:[#allocation3 + $0x10] sm:$0xff] %vm674_vm9, %v655_v53 }
 0x13e   : > { %726 = vst.msk [vmem:[#allocation3 + $0x10] sm:$0xff] %vm723_vm10, %v704_v42 }
 0x140   : > { %998 = vrot.lane.b32.xlu1 %v982_v22, %s1555_s28 }
 0x141   : > { %v755_v59 = vpop.permute.xlu2 %754 }
 0x142   : > { %v411_v56 = vpop.permute.xlu1 %410 }
 0x143   : > { %432 = vst.msk [vmem:[#allocation3 + $0x18] sm:$0xff] %vm428_vm3, %v411_v56  ;;  %v753_v57 = vpop.permute.xlu0 %752 }
 0x144   : > { %481 = vst.msk [vmem:[#allocation3 + $0x18] sm:$0xff] %vm477_vm4, %v460_v46 }
 0x145   : > { %775 = vst.msk [vmem:[#allocation3 + $0x10] sm:$0xff] %vm772_vm11, %v753_v57 }
 0x149   : > { %v462_v1 = vpop.permute.xlu2 %461 }
 0x14a   : > { %v558_v60 = vpop.permute.xlu1 %557 }
 0x14b   : > { %v509_v61 = vpop.permute.xlu0 %508 }
 0x14c   : > { %530 = vst.msk [vmem:[#allocation3 + $0x18] sm:$0xff] %vm526_vm6, %v509_v61  ;;  %v783_v62 = vld [vmem:[#allocation3 + $0x10] sm:$0xff] }
 0x14d   : > { %579 = vst.msk [vmem:[#allocation3 + $0x18] sm:$0xff] %vm575_vm7, %v558_v60  ;;  %1486 = vmatmul.msk.f32.gmra.mxu0 %vm792_vm12, %v783_v62 }
 0x14e   : > { %628 = vst.msk [vmem:[#allocation3 + $0x18] sm:$0xff] %vm624_vm8, %v607_v51 }
 0x151   : > { %v661_v4 = vpop.permute.xlu2 %660 }
 0x152   : > { %v657_v63 = vpop.permute.xlu1 %656 }
 0x153   : > { %678 = vst.msk [vmem:[#allocation3 + $0x18] sm:$0xff] %vm674_vm9, %v657_v63  ;;  %v415_v0 = vpop.permute.xlu0 %414 }
 0x154   : > { %434 = vst.msk [vmem:[#allocation3 + $0x28] sm:$0xff] %vm428_vm3, %v415_v0 }
 0x155   : > { %483 = vst.msk [vmem:[#allocation3 + $0x28] sm:$0xff] %vm477_vm4, %v464_v55 }
 0x159   : > { %v609_v8 = vpop.permute.xlu2 %608 }
 0x15a   : > { %v513_v2 = vpop.permute.xlu1 %512 }
 0x15b   : > { %532 = vst.msk [vmem:[#allocation3 + $0x28] sm:$0xff] %vm526_vm6, %v513_v2  ;;  %v706_v3 = vpop.permute.xlu0 %705 }
 0x15c   : > { %727 = vst.msk [vmem:[#allocation3 + $0x18] sm:$0xff] %vm723_vm10, %v706_v3 }
 0x15d   : > { %776 = vst.msk [vmem:[#allocation3 + $0x18] sm:$0xff] %vm772_vm11, %v755_v59 }
 0x161   : > { %v659_v11 = vpop.permute.xlu2 %658 }
 0x162   : > { %v562_v5 = vpop.permute.xlu1 %561 }
 0x163   : > { %581 = vst.msk [vmem:[#allocation3 + $0x28] sm:$0xff] %vm575_vm7, %v562_v5  ;;  %v413_v6 = vpop.permute.xlu0 %412 }
 0x164   : > { %433 = vst.msk [vmem:[#allocation3 + $0x20] sm:$0xff] %vm428_vm3, %v413_v6  ;;  %v784_v7 = vld [vmem:[#allocation3 + $0x18] sm:$0xff] }
 0x165   : > { %482 = vst.msk [vmem:[#allocation3 + $0x20] sm:$0xff] %vm477_vm4, %v462_v1  ;;  %1487 = vmatmul.msk.f32.gmra.mxu0 %vm792_vm12, %v784_v7 }
 0x169   : > { %v515_v17 = vpop.permute.xlu2 %514 }
 0x16a   : > { %v511_v9 = vpop.permute.xlu1 %510 }
 0x16b   : > { %531 = vst.msk [vmem:[#allocation3 + $0x20] sm:$0xff] %vm526_vm6, %v511_v9  ;;  %v611_v10 = vpop.permute.xlu0 %610 }
 0x16c   : > { %630 = vst.msk [vmem:[#allocation3 + $0x28] sm:$0xff] %vm624_vm8, %v611_v10 }
 0x16d   : > { %680 = vst.msk [vmem:[#allocation3 + $0x28] sm:$0xff] %vm674_vm9, %v661_v4 }
 0x171   : > { %v613_v23 = vpop.permute.xlu2 %612 }
 0x172   : > { %v710_v12 = vpop.permute.xlu1 %709 }
 0x173   : > { %729 = vst.msk [vmem:[#allocation3 + $0x28] sm:$0xff] %vm723_vm10, %v710_v12  ;;  %v560_v13 = vpop.permute.xlu0 %559 }
 0x174   : > { %580 = vst.msk [vmem:[#allocation3 + $0x20] sm:$0xff] %vm575_vm7, %v560_v13 }
 0x175   : > { %629 = vst.msk [vmem:[#allocation3 + $0x20] sm:$0xff] %vm624_vm8, %v609_v8 }
 0x176   : > { %679 = vst.msk [vmem:[#allocation3 + $0x20] sm:$0xff] %vm674_vm9, %v659_v11 }
 0x179   : > { %v761_v26 = vpop.permute.xlu2 %760 }
 0x17a   : > { %v417_v16 = vpop.permute.xlu1 %416 }
 0x17b   : > { %435 = vst.msk [vmem:[#allocation3 + $0x30] sm:$0xff] %vm428_vm3, %v417_v16  ;;  %v759_v14 = vpop.permute.xlu0 %758 }
 0x17c   : > { %778 = vst.msk [vmem:[#allocation3 + $0x28] sm:$0xff] %vm772_vm11, %v759_v14 }
 0x181   : > { %v517_v31 = vpop.permute.xlu2 %516 }
 0x182   : > { %v708_v19 = vpop.permute.xlu1 %707 }
 0x183   : > { %728 = vst.msk [vmem:[#allocation3 + $0x20] sm:$0xff] %vm723_vm10, %v708_v19  ;;  %v466_v20 = vpop.permute.xlu0 %465  ;;  %v786_v21 = vld [vmem:[#allocation3 + $0x28] sm:$0xff] }
 0x184   : > { %484 = vst.msk [vmem:[#allocation3 + $0x30] sm:$0xff] %vm477_vm4, %v466_v20  ;;  %1489 = vmatmul.msk.f32.vlgmr.msra.gmra.mxu3 %vm792_vm12, %v786_v21 }
 0x185   : > { %533 = vst.msk [vmem:[#allocation3 + $0x30] sm:$0xff] %vm526_vm6, %v515_v17 }
 0x189   : > { %v665_v40 = vpop.permute.xlu2 %664 }
 0x18a   : > { %v564_v24 = vpop.permute.xlu1 %563 }
 0x18b   : > { %582 = vst.msk [vmem:[#allocation3 + $0x30] sm:$0xff] %vm575_vm7, %v564_v24  ;;  %v757_v25 = vpop.permute.xlu0 %756 }
 0x18c   : > { %631 = vst.msk [vmem:[#allocation3 + $0x30] sm:$0xff] %vm624_vm8, %v613_v23 }
 0x18d   : > { %777 = vst.msk [vmem:[#allocation3 + $0x20] sm:$0xff] %vm772_vm11, %v757_v25 }
 0x191   : > { %v950_v55 = vpop.permute.xlu2 %949 }
 0x192   : > { %v712_v27 = vpop.permute.xlu1 %711  ;;  %974 = vst.msk [vmem:[#allocation5] sm:$0xff] %vm973_vm0, %v950_v55 }
 0x193   : > { %v663_v28 = vpop.permute.xlu0 %662 }
 0x194   : > { %681 = vst.msk [vmem:[#allocation3 + $0x30] sm:$0xff] %vm674_vm9, %v663_v28  ;;  %v785_v29 = vld [vmem:[#allocation3 + $0x20] sm:$0xff] }
 0x195   : > { %730 = vst.msk [vmem:[#allocation3 + $0x30] sm:$0xff] %vm723_vm10, %v712_v27  ;;  %1488 = vmatmul.msk.f32.gmra.mxu0 %vm792_vm12, %v785_v29 }
 0x196   : > { %779 = vst.msk [vmem:[#allocation3 + $0x30] sm:$0xff] %vm772_vm11, %v761_v26 }
 0x19a   : > { %v468_v32 = vpop.permute.xlu1 %467 }
 0x19b   : > { %v838_v33 = vpop.f32.mrf.mxu0  ;;  %v419_v34 = vpop.permute.xlu0 %418 }
 0x19c   : > { %v839_v35 = vadd.f32 %v1964_v30, %v838_v33  ;;  %436 = vst.msk [vmem:[#allocation3 + $0x38] sm:$0xff] %vm428_vm3, %v419_v34  ;;  %vm1120_vm3 = vcmask 326912   ;;  %v876_v33 = vld [vmem:[%s2256_s3 + $0x30] sm:$0xff] }
 0x19d   : > { %485 = vst.msk [vmem:[#allocation3 + $0x38] sm:$0xff] %vm477_vm4, %v468_v32  ;;  %v787_v36 = vld [vmem:[#allocation3 + $0x30] sm:$0xff]  ;;  %vm1169_vm4 = vcmask 392512   ;;  %v877_v32 = vld [vmem:[%s2256_s3 + $0x38] sm:$0xff] }
 0x19e   : > { %v862_v37 = vmax.f32 %v839_v35, 0.0  ;;  %534 = vst.msk [vmem:[#allocation3 + $0x38] sm:$0xff] %vm526_vm6, %v517_v31  ;;  %1490 = vmatmul.msk.f32.gmra.mxu3 %vm792_vm12, %v787_v36  ;;  %v878_v31 = vld [vmem:[%s2256_s3 + $0x40] sm:$0xff]  ;;  %v875_v35 = vld [vmem:[%s2256_s3 + $0x28] sm:$0xff]  ;;  %vm1268_vm6 = vcmask 523712  }
 0x19f   : > { %1369 = vmatpush.msra.mxu1 %v878_v31  ;;  %1509 = vmatpush.msra.mxu2 %v878_v31 }
 0x1a0   : > { %909 = vst.msk [vmem:[#allocation4 + $0x11] sm:$0xff] %vm880_vm14, %v862_v37  ;;  %v874_v37 = vld [vmem:[%s2256_s3 + $0x20] sm:$0xff] }
 0x1a1   : > { %1370 = vmatpush.msra.mxu1 %v877_v32  ;;  %1510 = vmatpush.msra.mxu2 %v877_v32 }
 0x1a2   : > { %v615_v38 = vpop.permute.xlu1 %614 }
 0x1a3   : > { %v566_v39 = vpop.permute.xlu0 %565  ;;  %1371 = vmatpush.msra.mxu1 %v876_v33  ;;  %1511 = vmatpush.msra.mxu2 %v876_v33 }
 0x1a4   : > { %583 = vst.msk [vmem:[#allocation3 + $0x38] sm:$0xff] %vm575_vm7, %v566_v39  ;;  %v872_v39 = vld [vmem:[%s2256_s3 + $0x10] sm:$0xff]  ;;  %vm1317_vm7 = vcmask 589312  }
 0x1a5   : > { %632 = vst.msk [vmem:[#allocation3 + $0x38] sm:$0xff] %vm624_vm8, %v615_v38  ;;  %1372 = vmatpush.msra.mxu1 %v875_v35  ;;  %1512 = vmatpush.msra.mxu2 %v875_v35  ;;  %v873_v38 = vld [vmem:[%s2256_s3 + $0x18] sm:$0xff]  ;;  %vm1337_vm8 = vcmask 588800  }
 0x1a6   : > { %682 = vst.msk [vmem:[#allocation3 + $0x38] sm:$0xff] %vm674_vm9, %v665_v40 }
 0x1a7   : > { %v1129_v15 = vld [vmem:[#allocation4 + $0x12] sm:$0xff]  ;;  %1373 = vmatpush.msra.mxu1 %v874_v37  ;;  %1513 = vmatpush.msra.mxu2 %v874_v37 }
 0x1a8   : > { %v1080_v41 = vld [vmem:[#allocation4 + $0x11] sm:$0xff]  ;;  %1145 = vrot.lane.b32.xlu2 %v1129_v15, %s1560_s22 }
 0x1a9   : > { %v1031_v42 = vld [vmem:[#allocation4 + $0x10] sm:$0xff]  ;;  %1096 = vrot.lane.b32.xlu0 %v1080_v41, %s1557_s30  ;;  %1374 = vmatpush.msra.mxu1 %v873_v38 }
 0x1aa   : > { %926 = vst.msk [vmem:[#allocation5 + $0x8] sm:$0xff] %vm880_vm14, %v1031_v42  ;;  %1047 = vrot.lane.b32.xlu1 %v1031_v42, %s1559_s7  ;;  %v763_v43 = vpop.permute.xlu1 %762  ;;  %1514 = vmatpush.msra.mxu2 %v873_v38 }
 0x1ab   : > { %v714_v44 = vpop.permute.xlu0 %713  ;;  %1375 = vmatpush.msra.mxu1 %v872_v39 }
 0x1ac   : > { %731 = vst.msk [vmem:[#allocation3 + $0x38] sm:$0xff] %vm723_vm10, %v714_v44  ;;  %1515 = vmatpush.msra.mxu2 %v872_v39 }
 0x1ad   : > { %780 = vst.msk [vmem:[#allocation3 + $0x38] sm:$0xff] %vm772_vm11, %v763_v43  ;;  %v870_v43 = vld [vmem:[%s2256_s3] sm:$0xff] }
 0x1b0   : > { %1000 = vrot.lane.b32.xlu2 %v1129_v15, %s1555_s28 }
 0x1b1   : > { %951 = vrot.lane.b32.xlu0 %v1080_v41, %s1553_s26  ;;  %v871_v41 = vld [vmem:[%s2256_s3 + $0x8] sm:$0xff] }
 0x1b2   : > { %v841_v45 = vpop.f32.mrf.mxu0  ;;  %v999_v60 = vpop.permute.xlu1 %998  ;;  %1376 = vmatpush.msra.mxu1 %v871_v41  ;;  %1516 = vmatpush.msra.mxu2 %v871_v41 }
 0x1b3   : > { %v842_v46 = vadd.f32 %v1964_v30, %v841_v45  ;;  %1023 = vst.msk [vmem:[#allocation5] sm:$0xff] %vm1022_vm1, %v999_v60 }
 0x1b4   : > { %v788_v47 = vld [vmem:[#allocation3 + $0x38] sm:$0xff]  ;;  %1377 = vmatpush.msra.mxu1 %v870_v43  ;;  %1517 = vmatpush.msra.mxu2 %v870_v43 }
 0x1b5   : > { %v863_v48 = vmax.f32 %v842_v46, 0.0  ;;  %1491 = vmatmul.msk.f32.gmra.mxu3 %vm792_vm12, %v788_v47  ;;  %v1186_v47 = vld [vmem:[#allocation4 + $0x90] sm:$0xff] }
 0x1b7   : > { %910 = vst.msk [vmem:[#allocation4 + $0x21] sm:$0xff] %vm880_vm14, %v863_v48 }
 0x1be   : > { %v1992_v49 = vld [vmem:[#allocation4 + $0x20] sm:$0xff] }
 0x1bf   : > { %927 = vst.msk [vmem:[#allocation5 + $0x10] sm:$0xff] %vm880_vm14, %v1992_v49  ;;  %v1277_v16 = vld [vmem:[#allocation4 + $0x22] sm:$0xff] }
 0x1c0   : > { %v1228_v14 = vld [vmem:[#allocation4 + $0x21] sm:$0xff] }
 0x1ca   : > { %v844_v51 = vpop.f32.mrf.mxu0 }
 0x1cb   : > { %v845_v52 = vadd.f32 %v1964_v30, %v844_v51  ;;  %v1284_v51 = vld [vmem:[#allocation4 + $0x92] sm:$0xff] }
 0x1cd   : > { %v864_v53 = vmax.f32 %v845_v52, 0.0  ;;  %v1235_v52 = vld [vmem:[#allocation4 + $0x91] sm:$0xff] }
 0x1cf   : > { %911 = vst.msk [vmem:[#allocation4 + $0x31] sm:$0xff] %vm880_vm14, %v864_v53 }
 0x1d6   : > { %v1999_v54 = vld [vmem:[#allocation4 + $0x30] sm:$0xff] }
 0x1d7   : > { %928 = vst.msk [vmem:[#allocation5 + $0x18] sm:$0xff] %vm880_vm14, %v1999_v54  ;;  %v2054_v24 = vld [vmem:[#allocation4 + $0x31] sm:$0xff] }
 0x1d8   : > { %v2060_v25 = vld [vmem:[#allocation4 + $0x32] sm:$0xff] }
 0x1e2   : > { %v847_v56 = vpop.f32.mrf.mxu0 }
 0x1e3   : > { %v848_v57 = vadd.f32 %v1964_v30, %v847_v56 }
 0x1e5   : > { %v865_v58 = vmax.f32 %v848_v57, 0.0 }
 0x1e7   : > { %912 = vst.msk [vmem:[#allocation4 + $0x41] sm:$0xff] %vm880_vm14, %v865_v58 }
 0x1ee   : > { %v2006_v59 = vld [vmem:[#allocation4 + $0x40] sm:$0xff] }
 0x1ef   : > { %929 = vst.msk [vmem:[#allocation5 + $0x20] sm:$0xff] %vm880_vm14, %v2006_v59  ;;  %v2062_v26 = vld [vmem:[#allocation4 + $0x41] sm:$0xff] }
 0x1f0   : > { %v2074_v29 = vld [vmem:[#allocation4 + $0x42] sm:$0xff] }
 0x202   : > { %v1146_v6 = vpop.permute.xlu2 %1145 }
 0x207   : > { %v853_v61 = vpop.f32.mrf.mxu3 }
 0x208   : > { %v854_v62 = vadd.f32 %v1964_v30, %v853_v61 }
 0x20a   : > { %v867_v63 = vmax.f32 %v854_v62, 0.0  ;;  %v1001_v13 = vpop.permute.xlu2 %1000 }
 0x20c   : > { %914 = vst.msk [vmem:[#allocation4 + $0x61] sm:$0xff] %vm880_vm14, %v867_v63 }
 0x212   : > { %v850_v0 = vpop.f32.mrf.mxu0 }
 0x213   : > { %v851_v1 = vadd.f32 %v1964_v30, %v850_v0  ;;  %v1281_v2 = vld [vmem:[#allocation4 + $0x62] sm:$0xff] }
 0x214   : > { %v1232_v3 = vld [vmem:[#allocation4 + $0x61] sm:$0xff]  ;;  %1301 = vrot.lane.b32.xlu2 %v1281_v2, %s1561_s23 }
 0x215   : > { %v1183_v4 = vld [vmem:[#allocation4 + $0x60] sm:$0xff]  ;;  %1252 = vrot.lane.b32.xlu0 %v1232_v3, %s1562_s24  ;;  %v866_v5 = vmax.f32 %v851_v1, 0.0 }
 0x216   : > { %931 = vst.msk [vmem:[#allocation5 + $0x30] sm:$0xff] %vm880_vm14, %v1183_v4  ;;  %1203 = vrot.lane.b32.xlu1 %v1183_v4, %s1563_s25 }
 0x217   : > { %913 = vst.msk [vmem:[#allocation4 + $0x51] sm:$0xff] %vm880_vm14, %v866_v5 }
 0x21b   : > { %v1097_v7 = vpop.permute.xlu0 %1096 }
 0x21c   : > { %v1048_v8 = vpop.permute.xlu1 %1047  ;;  %1155 = vrot.lane.b32.xlu2 %v1281_v2, %s1560_s22 }
 0x21d   : > { %1072 = vst.msk [vmem:[#allocation5] sm:$0xff] %vm1071_vm2, %v1048_v8  ;;  %1106 = vrot.lane.b32.xlu0 %v1232_v3, %s1557_s30 }
 0x21e   : > { %1121 = vst.msk [vmem:[#allocation5] sm:$0xff] %vm1120_vm3, %v1097_v7  ;;  %1057 = vrot.lane.b32.xlu1 %v1183_v4, %s1559_s7  ;;  %v2024_v9 = vld [vmem:[#allocation4 + $0x50] sm:$0xff] }
 0x21f   : > { %1170 = vst.msk [vmem:[#allocation5] sm:$0xff] %vm1169_vm4, %v1146_v6  ;;  %v1084_v40 = vld [vmem:[#allocation4 + $0x51] sm:$0xff] }
 0x220   : > { %930 = vst.msk [vmem:[#allocation5 + $0x28] sm:$0xff] %vm880_vm14, %v2024_v9  ;;  %v1133_v15 = vld [vmem:[#allocation4 + $0x52] sm:$0xff] }
 0x221   : > { %v856_v10 = vpop.f32.mrf.mxu3 }
 0x222   : > { %v857_v11 = vadd.f32 %v1964_v30, %v856_v10 }
 0x223   : > { %v952_v12 = vpop.permute.xlu0 %951 }
 0x224   : > { %975 = vst.msk [vmem:[#allocation5 + $0x8] sm:$0xff] %vm973_vm0, %v952_v12  ;;  %v868_v17 = vmax.f32 %v857_v11, 0.0  ;;  %1293 = vrot.lane.b32.xlu2 %v1277_v16, %s1561_s23 }
 0x225   : > { %1024 = vst.msk [vmem:[#allocation5 + $0x8] sm:$0xff] %vm1022_vm1, %v1001_v13  ;;  %1244 = vrot.lane.b32.xlu0 %v1228_v14, %s1562_s24 }
 0x226   : > { %1195 = vrot.lane.b32.xlu1 %v1992_v49, %s1563_s25  ;;  %915 = vst.msk [vmem:[#allocation4 + $0x71] sm:$0xff] %vm880_vm14, %v868_v17 }
 0x22c   : > { %1049 = vrot.lane.b32.xlu2 %v1992_v49, %s1559_s7 }
 0x22d   : > { %1010 = vrot.lane.b32.xlu0 %v1281_v2, %s1555_s28  ;;  %v1037_v18 = vld [vmem:[#allocation4 + $0x70] sm:$0xff] }
 0x22e   : > { %961 = vrot.lane.b32.xlu1 %v1232_v3, %s1553_s26  ;;  %932 = vst.msk [vmem:[#allocation5 + $0x38] sm:$0xff] %vm880_vm14, %v1037_v18  ;;  %v1282_v22 = vld [vmem:[#allocation4 + $0x72] sm:$0xff] }
 0x22f   : > { %v940_v23 = vld [vmem:[#allocation4 + $0x71] sm:$0xff] }
 0x234   : > { %1059 = vrot.lane.b32.xlu2 %v1037_v18, %s1559_s7 }
 0x235   : > { %1147 = vrot.lane.b32.xlu0 %v1277_v16, %s1560_s22 }
 0x236   : > { %1098 = vrot.lane.b32.xlu1 %v1228_v14, %s1557_s30 }
 0x238   : > { %v859_v19 = vpop.f32.mrf.mxu3 }
 0x239   : > { %v860_v20 = vadd.f32 %v1964_v30, %v859_v19 }
 0x23b   : > { %v869_v21 = vmax.f32 %v860_v20, 0.0 }
 0x23c   : > { %1197 = vrot.lane.b32.xlu2 %v1999_v54, %s1563_s25 }
 0x23d   : > { %1002 = vrot.lane.b32.xlu0 %v1277_v16, %s1555_s28  ;;  %916 = vst.msk [vmem:[#allocation4 + $0x81] sm:$0xff] %vm880_vm14, %v869_v21 }
 0x23e   : > { %953 = vrot.lane.b32.xlu1 %v1228_v14, %s1553_s26 }
 0x244   : > { %963 = vrot.lane.b32.xlu2 %v940_v23, %s1553_s26  ;;  %v1185_v27 = vld [vmem:[#allocation4 + $0x80] sm:$0xff] }
 0x245   : > { %1303 = vrot.lane.b32.xlu0 %v1282_v22, %s1561_s23  ;;  %v1234_v28 = vld [vmem:[#allocation4 + $0x81] sm:$0xff] }
 0x246   : > { %1205 = vrot.lane.b32.xlu1 %v1037_v18, %s1563_s25  ;;  %v1283_v34 = vld [vmem:[#allocation4 + $0x82] sm:$0xff] }
 0x24c   : > { %1100 = vrot.lane.b32.xlu2 %v2054_v24, %s1557_s30 }
 0x24d   : > { %1157 = vrot.lane.b32.xlu0 %v1282_v22, %s1560_s22 }
 0x24e   : > { %1254 = vrot.lane.b32.xlu1 %v940_v23, %s1562_s24 }
 0x254   : > { %957 = vrot.lane.b32.xlu2 %v2062_v26, %s1553_s26 }
 0x255   : > { %1295 = vrot.lane.b32.xlu0 %v2060_v25, %s1561_s23 }
 0x256   : > { %1108 = vrot.lane.b32.xlu1 %v940_v23, %s1557_s30 }
 0x25c   : > { %1207 = vrot.lane.b32.xlu2 %v1185_v27, %s1563_s25 }
 0x25d   : > { %1051 = vrot.lane.b32.xlu0 %v1999_v54, %s1559_s7 }
 0x25e   : > { %1246 = vrot.lane.b32.xlu1 %v2054_v24, %s1562_s24 }
 0x264   : > { %1256 = vrot.lane.b32.xlu2 %v1234_v28, %s1562_s24 }
 0x265   : > { %1006 = vrot.lane.b32.xlu0 %v2074_v29, %s1555_s28 }
 0x266   : > { %1012 = vrot.lane.b32.xlu1 %v1282_v22, %s1555_s28 }
 0x26c   : > { %1110 = vrot.lane.b32.xlu2 %v1234_v28, %s1557_s30 }
 0x26d   : > { %1061 = vrot.lane.b32.xlu0 %v1185_v27, %s1559_s7 }
 0x26e   : > { %1149 = vrot.lane.b32.xlu1 %v2060_v25, %s1560_s22  ;;  %v2084_v30 = vpop.permute.xlu2 %1301 }
 0x274   : > { %1248 = vrot.lane.b32.xlu2 %v2062_v26, %s1562_s24 }
 0x275   : > { %1199 = vrot.lane.b32.xlu0 %v2006_v59, %s1563_s25 }
 0x276   : > { %1305 = vrot.lane.b32.xlu1 %v1283_v34, %s1561_s23  ;;  %v2103_v36 = vpop.permute.xlu2 %1155 }
 0x27c   : > { %1104 = vrot.lane.b32.xlu2 %v1084_v40, %s1557_s30 }
 0x27d   : > { %1153 = vrot.lane.b32.xlu0 %v1133_v15, %s1560_s22 }
 0x27e   : > { %1055 = vrot.lane.b32.xlu1 %v2024_v9, %s1559_s7  ;;  %v1294_v42 = vpop.permute.xlu2 %1293 }
 0x284   : > { %1008 = vrot.lane.b32.xlu2 %v1133_v15, %s1555_s28 }
 0x285   : > { %959 = vrot.lane.b32.xlu0 %v1084_v40, %s1553_s26 }
 0x286   : > { %1159 = vrot.lane.b32.xlu1 %v1283_v34, %s1560_s22  ;;  %v1050_v44 = vpop.permute.xlu2 %1049 }
 0x287   : > { %v2127_v45 = vpop.permute.xlu0 %1252  ;;  %1073 = vst.msk [vmem:[#allocation5 + $0x8] sm:$0xff] %vm1071_vm2, %v1050_v44  ;;  %v1541_v44 = vld [vmem:[%s2257_s4] ss:$0 sm:$0xff] }
 0x288   : > { %v2129_v46 = vpop.permute.xlu1 %1203 }
 0x28c   : > { %955 = vrot.lane.b32.xlu2 %v2054_v24, %s1553_s26 }
 0x28d   : > { %1209 = vrot.lane.b32.xlu0 %v1186_v47, %s1563_s25 }
 0x28e   : > { %1297 = vrot.lane.b32.xlu1 %v2074_v29, %s1561_s23  ;;  %v1060_v48 = vpop.permute.xlu2 %1059 }
 0x28f   : > { %v2137_v49 = vpop.permute.xlu0 %1106 }
 0x290   : > { %v2139_v50 = vpop.permute.xlu1 %1057 }
 0x294   : > { %1307 = vrot.lane.b32.xlu2 %v1284_v51, %s1561_s23 }
 0x295   : > { %1258 = vrot.lane.b32.xlu0 %v1235_v52, %s1562_s24 }
 0x296   : > { %1004 = vrot.lane.b32.xlu1 %v2060_v25, %s1555_s28  ;;  %v1198_v53 = vpop.permute.xlu2 %1197 }
 0x297   : > { %v1245_v54 = vpop.permute.xlu0 %1244 }
 0x298   : > { %v1196_v55 = vpop.permute.xlu1 %1195 }
 0x299   : > { %1220 = vst.msk [vmem:[#allocation5] sm:$0xff] %vm1219_vm5, %v1196_v55 }
 0x29a   : > { %1269 = vst.msk [vmem:[#allocation5] sm:$0xff] %vm1268_vm6, %v1245_v54 }
 0x29b   : > { %1318 = vst.msk [vmem:[#allocation5] sm:$0xff] %vm1317_vm7, %v1294_v42 }
 0x29c   : > { %1151 = vrot.lane.b32.xlu2 %v2074_v29, %s1560_s22 }
 0x29d   : > { %1053 = vrot.lane.b32.xlu0 %v2006_v59, %s1559_s7 }
 0x29e   : > { %1102 = vrot.lane.b32.xlu1 %v2062_v26, %s1557_s30  ;;  %v964_v56 = vpop.permute.xlu2 %963  ;;  %s1503_s30 = sshll.u32 %s2260_s19, 6 }
 0x29f   : > { %v1011_v57 = vpop.permute.xlu0 %1010  ;;  %981 = vst.msk [vmem:[#allocation5 + $0x38] sm:$0xff] %vm973_vm0, %v964_v56 }
 0x2a0   : > { %v962_v58 = vpop.permute.xlu1 %961 }
 0x2a1   : > { %980 = vst.msk [vmem:[#allocation5 + $0x30] sm:$0xff] %vm973_vm0, %v962_v58 }
 0x2a2   : > { %1029 = vst.msk [vmem:[#allocation5 + $0x30] sm:$0xff] %vm1022_vm1, %v1011_v57  ;;  %v1326_v60 = vld [vmem:[#allocation5] sm:$0xff] }
 0x2a3   : > { %1078 = vst.msk [vmem:[#allocation5 + $0x30] sm:$0xff] %vm1071_vm2, %v1060_v48  ;;  %1492 = vmatmul.msk.f32.vlgmr.msra.gmra.mxu1 %vm1337_vm8, %v1326_v60 }
 0x2a4   : > { %1299 = vrot.lane.b32.xlu2 %v1133_v15, %s1561_s23  ;;  %s2231_s23 = scalar_lea.vmem %s2258_s5, %s1503_s30 }
 0x2a5   : > { %1201 = vrot.lane.b32.xlu0 %v2024_v9, %s1563_s25 }
 0x2a6   : > { %1250 = vrot.lane.b32.xlu1 %v1084_v40, %s1562_s24  ;;  %v1101_v59 = vpop.permute.xlu2 %1100 }
 0x2a7   : > { %v1148_v61 = vpop.permute.xlu0 %1147 }
 0x2a8   : > { %v1099_v62 = vpop.permute.xlu1 %1098 }
 0x2a9   : > { %1122 = vst.msk [vmem:[#allocation5 + $0x8] sm:$0xff] %vm1120_vm3, %v1099_v62 }
 0x2aa   : > { %1171 = vst.msk [vmem:[#allocation5 + $0x8] sm:$0xff] %vm1169_vm4, %v1148_v61 }
 0x2ab   : > { %1221 = vst.msk [vmem:[#allocation5 + $0x8] sm:$0xff] %vm1219_vm5, %v1198_v53 }
 0x2ae   : > { %v958_v63 = vpop.permute.xlu2 %957 }
 0x2af   : > { %v1003_v0 = vpop.permute.xlu0 %1002  ;;  %978 = vst.msk [vmem:[#allocation5 + $0x20] sm:$0xff] %vm973_vm0, %v958_v63 }
 0x2b0   : > { %v954_v1 = vpop.permute.xlu1 %953 }
 0x2b1   : > { %976 = vst.msk [vmem:[#allocation5 + $0x10] sm:$0xff] %vm973_vm0, %v954_v1 }
 0x2b2   : > { %1025 = vst.msk [vmem:[#allocation5 + $0x10] sm:$0xff] %vm1022_vm1, %v1003_v0 }
 0x2b6   : > { %v1208_v2 = vpop.permute.xlu2 %1207 }
 0x2b7   : > { %v1304_v3 = vpop.permute.xlu0 %1303 }
 0x2b8   : > { %v1206_v4 = vpop.permute.xlu1 %1205 }
 0x2be   : > { %v1257_v5 = vpop.permute.xlu2 %1256 }
 0x2bf   : > { %v1158_v6 = vpop.permute.xlu0 %1157 }
 0x2c0   : > { %v1255_v7 = vpop.permute.xlu1 %1254 }
 0x2c6   : > { %v1111_v8 = vpop.permute.xlu2 %1110 }
 0x2c7   : > { %v1296_v9 = vpop.permute.xlu0 %1295 }
 0x2c8   : > { %v1109_v10 = vpop.permute.xlu1 %1108 }
 0x2c9   : > { %1127 = vst.msk [vmem:[#allocation5 + $0x30] sm:$0xff] %vm1120_vm3, %v1109_v10 }
 0x2ca   : > { %1176 = vst.msk [vmem:[#allocation5 + $0x30] sm:$0xff] %vm1169_vm4, %v1158_v6 }
 0x2cb   : > { %1226 = vst.msk [vmem:[#allocation5 + $0x30] sm:$0xff] %vm1219_vm5, %v1208_v2 }
 0x2cc   : > { %1275 = vst.msk [vmem:[#allocation5 + $0x30] sm:$0xff] %vm1268_vm6, %v1257_v5 }
 0x2ce   : > { %v1249_v11 = vpop.permute.xlu2 %1248 }
 0x2cf   : > { %v1052_v12 = vpop.permute.xlu0 %1051 }
 0x2d0   : > { %v1247_v13 = vpop.permute.xlu1 %1246  ;;  %1074 = vst.msk [vmem:[#allocation5 + $0x10] sm:$0xff] %vm1071_vm2, %v1052_v12 }
 0x2d1   : > { %1270 = vst.msk [vmem:[#allocation5 + $0x8] sm:$0xff] %vm1268_vm6, %v1247_v13 }
 0x2d2   : > { %1319 = vst.msk [vmem:[#allocation5 + $0x8] sm:$0xff] %vm1317_vm7, %v1296_v9 }
 0x2d3   : > { %1123 = vst.msk [vmem:[#allocation5 + $0x10] sm:$0xff] %vm1120_vm3, %v1101_v59 }
 0x2d6   : > { %v1105_v16 = vpop.permute.xlu2 %1104 }
 0x2d7   : > { %v1007_v14 = vpop.permute.xlu0 %1006 }
 0x2d8   : > { %v1013_v17 = vpop.permute.xlu1 %1012  ;;  %1027 = vst.msk [vmem:[#allocation5 + $0x20] sm:$0xff] %vm1022_vm1, %v1007_v14 }
 0x2d9   : > { %1030 = vst.msk [vmem:[#allocation5 + $0x38] sm:$0xff] %vm1022_vm1, %v1013_v17  ;;  %v1327_v18 = vld [vmem:[#allocation5 + $0x8] sm:$0xff] }
 0x2da   : > { %1493 = vmatmul.msk.f32.gmra.mxu1 %vm1337_vm8, %v1327_v18 }
 0x2de   : > { %v1009_v19 = vpop.permute.xlu2 %1008 }
 0x2df   : > { %v1062_v20 = vpop.permute.xlu0 %1061 }
 0x2e0   : > { %v1150_v21 = vpop.permute.xlu1 %1149  ;;  %1079 = vst.msk [vmem:[#allocation5 + $0x38] sm:$0xff] %vm1071_vm2, %v1062_v20 }
 0x2e1   : > { %1172 = vst.msk [vmem:[#allocation5 + $0x10] sm:$0xff] %vm1169_vm4, %v1150_v21 }
 0x2e2   : > { %1128 = vst.msk [vmem:[#allocation5 + $0x38] sm:$0xff] %vm1120_vm3, %v1111_v8 }
 0x2e6   : > { %v956_v22 = vpop.permute.xlu2 %955 }
 0x2e7   : > { %v1200_v23 = vpop.permute.xlu0 %1199  ;;  %977 = vst.msk [vmem:[#allocation5 + $0x18] sm:$0xff] %vm973_vm0, %v956_v22 }
 0x2e8   : > { %v1306_v24 = vpop.permute.xlu1 %1305  ;;  %1222 = vst.msk [vmem:[#allocation5 + $0x10] sm:$0xff] %vm1219_vm5, %v1200_v23 }
 0x2e9   : > { %1324 = vst.msk [vmem:[#allocation5 + $0x30] sm:$0xff] %vm1317_vm7, %v1306_v24 }
 0x2ea   : > { %1271 = vst.msk [vmem:[#allocation5 + $0x10] sm:$0xff] %vm1268_vm6, %v1249_v11 }
 0x2ee   : > { %v1308_v32 = vpop.permute.xlu2 %1307 }
 0x2ef   : > { %v1154_v25 = vpop.permute.xlu0 %1153 }
 0x2f0   : > { %v1056_v26 = vpop.permute.xlu1 %1055  ;;  %v1332_v38 = vld [vmem:[#allocation5 + $0x30] sm:$0xff] }
 0x2f1   : > { %1076 = vst.msk [vmem:[#allocation5 + $0x20] sm:$0xff] %vm1071_vm2, %v1056_v26 }
 0x2f2   : > { %1125 = vst.msk [vmem:[#allocation5 + $0x20] sm:$0xff] %vm1120_vm3, %v1105_v16 }
 0x2f3   : > { %1174 = vst.msk [vmem:[#allocation5 + $0x20] sm:$0xff] %vm1169_vm4, %v1154_v25 }
 0x2f4   : > { %1224 = vst.msk [vmem:[#allocation5 + $0x20] sm:$0xff] %vm1219_vm5, %v2129_v46 }
 0x2f5   : > { %1273 = vst.msk [vmem:[#allocation5 + $0x20] sm:$0xff] %vm1268_vm6, %v2127_v45 }
 0x2f6   : > { %1322 = vst.msk [vmem:[#allocation5 + $0x20] sm:$0xff] %vm1317_vm7, %v2084_v30  ;;  %v1152_v37 = vpop.permute.xlu2 %1151 }
 0x2f7   : > { %v960_v27 = vpop.permute.xlu0 %959 }
 0x2f8   : > { %v1160_v28 = vpop.permute.xlu1 %1159  ;;  %979 = vst.msk [vmem:[#allocation5 + $0x28] sm:$0xff] %vm973_vm0, %v960_v27 }
 0x2f9   : > { %1177 = vst.msk [vmem:[#allocation5 + $0x38] sm:$0xff] %vm1169_vm4, %v1160_v28 }
 0x2fa   : > { %1028 = vst.msk [vmem:[#allocation5 + $0x28] sm:$0xff] %vm1022_vm1, %v1009_v19 }
 0x2fb   : > { %1077 = vst.msk [vmem:[#allocation5 + $0x28] sm:$0xff] %vm1071_vm2, %v2139_v50 }
 0x2fc   : > { %1126 = vst.msk [vmem:[#allocation5 + $0x28] sm:$0xff] %vm1120_vm3, %v2137_v49 }
 0x2fd   : > { %1175 = vst.msk [vmem:[#allocation5 + $0x28] sm:$0xff] %vm1169_vm4, %v2103_v36  ;;  %v1330_v29 = vld [vmem:[#allocation5 + $0x20] sm:$0xff] }
 0x2fe   : > { %1225 = vst.msk [vmem:[#allocation5 + $0x28] sm:$0xff] %vm1219_vm5, %v1206_v4  ;;  %1496 = vmatmul.msk.f32.vlgmr.msra.gmra.mxu2 %vm1337_vm8, %v1330_v29  ;;  %v1300_v43 = vpop.permute.xlu2 %1299 }
 0x2ff   : > { %1274 = vst.msk [vmem:[#allocation5 + $0x28] sm:$0xff] %vm1268_vm6, %v1255_v7  ;;  %v1210_v30 = vpop.permute.xlu0 %1209 }
 0x300   : > { %1323 = vst.msk [vmem:[#allocation5 + $0x28] sm:$0xff] %vm1317_vm7, %v1304_v3  ;;  %v1298_v31 = vpop.permute.xlu1 %1297 }
 0x301   : > { %1320 = vst.msk [vmem:[#allocation5 + $0x10] sm:$0xff] %vm1317_vm7, %v1298_v31 }
 0x302   : > { %1227 = vst.msk [vmem:[#allocation5 + $0x38] sm:$0xff] %vm1219_vm5, %v1210_v30 }
 0x307   : > { %v1331_v33 = vld [vmem:[#allocation5 + $0x28] sm:$0xff]  ;;  %v1259_v34 = vpop.permute.xlu0 %1258 }
 0x308   : > { %v1005_v35 = vpop.permute.xlu1 %1004  ;;  %1497 = vmatmul.msk.f32.gmra.mxu2 %vm1337_vm8, %v1331_v33  ;;  %1276 = vst.msk [vmem:[#allocation5 + $0x38] sm:$0xff] %vm1268_vm6, %v1259_v34  ;;  %v1328_v36 = vld [vmem:[#allocation5 + $0x10] sm:$0xff] }
 0x309   : > { %1026 = vst.msk [vmem:[#allocation5 + $0x18] sm:$0xff] %vm1022_vm1, %v1005_v35  ;;  %1494 = vmatmul.msk.f32.gmra.mxu1 %vm1337_vm8, %v1328_v36 }
 0x30a   : > { %1325 = vst.msk [vmem:[#allocation5 + $0x38] sm:$0xff] %vm1317_vm7, %v1308_v32 }
 0x30f   : > { %v1054_v39 = vpop.permute.xlu0 %1053 }
 0x310   : > { %v1103_v40 = vpop.permute.xlu1 %1102  ;;  %1498 = vmatmul.msk.f32.gmra.mxu2 %vm1337_vm8, %v1332_v38  ;;  %1075 = vst.msk [vmem:[#allocation5 + $0x18] sm:$0xff] %vm1071_vm2, %v1054_v39 }
 0x311   : > { %1124 = vst.msk [vmem:[#allocation5 + $0x18] sm:$0xff] %vm1120_vm3, %v1103_v40  ;;  %v1333_v15 = vld [vmem:[#allocation5 + $0x38] sm:$0xff] }
 0x312   : > { %1173 = vst.msk [vmem:[#allocation5 + $0x18] sm:$0xff] %vm1169_vm4, %v1152_v37 }
 0x317   : > { %v1202_v41 = vpop.permute.xlu0 %1201 }
 0x318   : > { %v1251_v42 = vpop.permute.xlu1 %1250  ;;  %1499 = vmatmul.msk.f32.gmra.mxu2 %vm1337_vm8, %v1333_v15  ;;  %1223 = vst.msk [vmem:[#allocation5 + $0x18] sm:$0xff] %vm1219_vm5, %v1202_v41 }
 0x319   : > { %1272 = vst.msk [vmem:[#allocation5 + $0x18] sm:$0xff] %vm1268_vm6, %v1251_v42 }
 0x31a   : > { %1321 = vst.msk [vmem:[#allocation5 + $0x18] sm:$0xff] %vm1317_vm7, %v1300_v43 }
 0x320   : > { %v1379_v45 = vpop.f32.mrf.mxu1 }
 0x321   : > { %v1380_v46 = vadd.f32 %v1541_v44, %v1379_v45  ;;  %v1329_v47 = vld [vmem:[#allocation5 + $0x18] sm:$0xff] }
 0x322   : > { %1495 = vmatmul.msk.f32.gmra.mxu1 %vm1337_vm8, %v1329_v47 }
 0x323   : > { %v1403_v48 = vmax.f32 %v1380_v46, 0.0 }
 0x325   : > { %1411 = vst.msk [vmem:[%s2231_s23] sm:$0xff] %vm880_vm14, %v1403_v48 }
 0x357   : > { %v1382_v49 = vpop.f32.mrf.mxu1 }
 0x358   : > { %v1383_v50 = vadd.f32 %v1541_v44, %v1382_v49 }
 0x35a   : > { %v1404_v51 = vmax.f32 %v1383_v50, 0.0 }
 0x35c   : > { %1412 = vst.msk [vmem:[%s2231_s23 + $0x8] sm:$0xff] %vm880_vm14, %v1404_v51 }
 0x381   : > { %v1391_v52 = vpop.f32.mrf.mxu2 }
 0x382   : > { %v1392_v53 = vadd.f32 %v1541_v44, %v1391_v52 }
 0x384   : > { %v1407_v54 = vmax.f32 %v1392_v53, 0.0 }
 0x386   : > { %1415 = vst.msk [vmem:[%s2231_s23 + $0x20] sm:$0xff] %vm880_vm14, %v1407_v54  ;;  %v1385_v55 = vpop.f32.mrf.mxu1 }
 0x387   : > { %v1386_v56 = vadd.f32 %v1541_v44, %v1385_v55 }
 0x389   : > { %v1405_v57 = vmax.f32 %v1386_v56, 0.0 }
 0x38b   : > { %1413 = vst.msk [vmem:[%s2231_s23 + $0x10] sm:$0xff] %vm880_vm14, %v1405_v57  ;;  %v1394_v58 = vpop.f32.mrf.mxu2 }
 0x38c   : > { %v1395_v60 = vadd.f32 %v1541_v44, %v1394_v58 }
 0x38e   : > { %v1408_v59 = vmax.f32 %v1395_v60, 0.0 }
 0x390   : > { %1416 = vst.msk [vmem:[%s2231_s23 + $0x28] sm:$0xff] %vm880_vm14, %v1408_v59 }
 0x393   : > { %v1397_v61 = vpop.f32.mrf.mxu2 }
 0x394   : > { %v1398_v62 = vadd.f32 %v1541_v44, %v1397_v61 }
 0x396   : > { %v1409_v63 = vmax.f32 %v1398_v62, 0.0 }
 0x398   : > { %1417 = vst.msk [vmem:[%s2231_s23 + $0x30] sm:$0xff] %vm880_vm14, %v1409_v63 }
 0x39b   : > { %v1400_v0 = vpop.f32.mrf.mxu2 }
 0x39c   : > { %v1401_v1 = vadd.f32 %v1541_v44, %v1400_v0 }
 0x39e   : > { %v1410_v2 = vmax.f32 %v1401_v1, 0.0 }
 0x39f   : > { %v1388_v3 = vpop.f32.mrf.mxu1 }
 0x3a0   : > { %1418 = vst.msk [vmem:[%s2231_s23 + $0x38] sm:$0xff] %vm880_vm14, %v1410_v2  ;;  %v1389_v4 = vadd.f32 %v1541_v44, %v1388_v3 }
 0x3a2   : > { %v1406_v5 = vmax.f32 %v1389_v4, 0.0 }
 0x3a4   : > { %1414 = vst.msk [vmem:[%s2231_s23 + $0x18] sm:$0xff] %vm880_vm14, %v1406_v5 }
 0x3a5 PF: > { %s15_s18 = sadd.s32 1, %s1548_s18  }
 0x3a6   : > { %p12_p4 = scmp.ge.s32.totalorder %s15_s18, 4  }
 0x3a8   :  { %14 = sbr.rel (!%p12_p4) target bundleno = 1 (0x1), region = 76 }

</bundles_post_ra>
